<compile_context>
chip_gen: v5e
topology: v5e:2x2
jax: 0.10.0
libtpu: 0.0.40
codegen_flags: <defaults>
</compile_context>

<pallas_src>
import jax
import jax.numpy as jnp
from jax.experimental import pallas as pl
from jax.experimental.pallas import tpu as pltpu


def agcn_block_kernel(x_ref, at_ref, wg_ref, bg_ref, w1_ref, b1_ref, w2_ref,
                      b2_ref, o_ref):
    nb, T, V, C_in = x_ref.shape
    C_out = wg_ref.shape[1]
    TV = T * V
    f32 = jnp.float32

    at = at_ref[...].astype(f32)        # (V, V)      == A^T
    wg = wg_ref[...].astype(f32)        # (C_in, C_out)
    bg = bg_ref[...].astype(f32)        # (1, C_out)
    w1 = w1_ref[...].astype(f32)        # (C_out, Cm)
    b1 = b1_ref[...].astype(f32)        # (1, Cm)
    w2 = w2_ref[...].astype(f32)        # (Cm, C_out)
    b2 = b2_ref[...].astype(f32)        # (1, C_out)

    # whole per-step batch block, frames on the leading axis, channels on lanes
    x = x_ref[...].astype(f32).reshape(nb * T, V, C_in)        # (nb*T, V, C_in)

    # --- GraphConvolution: graph mixing over V, batched over the nb*T frames.
    at_b = jnp.broadcast_to(at, (nb * T, V, V))                # hoisted once
    g = jnp.einsum('bwv,bvc->bwc', at_b, x,
                   preferred_element_type=f32)                 # (nb*T, V, C_in)
    g = g.reshape(nb * TV, C_in)                               # tokens x C_in

    # --- 1x1 conv (channel mixing) + bias + ReLU; free dim = nb*T*V tokens.
    z = jnp.dot(g, wg, preferred_element_type=f32) + bg        # (nb*TV, C_out)
    z = jnp.maximum(z, 0.0)

    # --- ChannelAttention: mean + max over the V nodes of every frame.
    z3 = z.reshape(nb * T, V, C_out)
    s = jnp.sum(z3, axis=1) * f32(1.0 / V) + jnp.max(z3, axis=1)   # (nb*T, C_out)
    h = jnp.maximum(jnp.dot(s, w1, preferred_element_type=f32) + b1, 0.0)
    att = jax.nn.sigmoid(jnp.dot(h, w2, preferred_element_type=f32) + b2)

    # --- gate + final ReLU.
    out = jnp.maximum(z3 * att[:, None, :], 0.0)               # (nb*T, V, C_out)
    out = out.reshape(nb, TV, C_out)

    # lane-dense stores: one (C_out, T*V) slab (256-wide lanes) per element.
    for n in range(nb):                                        # static unroll
        o_ref[n] = out[n].T.astype(o_ref.dtype)


def agcn_block(x, A, wg, bg, w1, b1, w2, b2, *, nb=None):
    """x: (N, C_in, T, V) NCHW.  Returns (N, C_out, T, V), like the PyTorch module."""
    N, C_in, T, V = x.shape
    C_out, Cm = w2.shape
    assert wg.shape == (C_out, C_in) and w1.shape == (Cm, C_out)
    assert V % 8 == 0, "V must be a multiple of 8 (sublane tiling)"
    TV = T * V

    if nb is None:
        # ~2 MiB input block target (safe w/ double buffering on v5e/v6e/v7x
        # scoped-VMEM defaults); keep >= 2 grid steps when N allows (v7x megacore).
        per_batch = C_in * T * V * x.dtype.itemsize
        cap = max(1, (2 << 20) // max(per_batch, 1))
        nb = 1
        for cand in range(1, N + 1):
            if N % cand == 0 and cand <= cap and (N // cand >= 2 or N == 1):
                nb = cand
    assert N % nb == 0
    grid = (N // nb,)

    # Layout plumbing (outside the kernel): channels-last tokens for the input,
    # matmul-ready transposed weights, row-vector biases.
    x_cl = jnp.transpose(x, (0, 2, 3, 1))          # (N, T, V, C_in)
    at = A.T                                       # (V, V)
    wg_t, w1_t, w2_t = wg.T, w1.T, w2.T            # (C_in,C_out) (C_out,Cm) (Cm,C_out)
    bg_r = bg.reshape(1, C_out)
    b1_r = b1.reshape(1, Cm)
    b2_r = b2.reshape(1, C_out)

    out_flat = pl.pallas_call(
        agcn_block_kernel,
        out_shape=jax.ShapeDtypeStruct((N, C_out, TV), x.dtype),
        grid=grid,
        in_specs=[
            pl.BlockSpec((nb, T, V, C_in), lambda i: (i, 0, 0, 0)),  # x block
            pl.BlockSpec((V, V), lambda i: (0, 0)),                  # A^T (resident)
            pl.BlockSpec((C_in, C_out), lambda i: (0, 0)),           # Wg^T
            pl.BlockSpec((1, C_out), lambda i: (0, 0)),              # bg
            pl.BlockSpec((C_out, Cm), lambda i: (0, 0)),             # W1^T
            pl.BlockSpec((1, Cm), lambda i: (0, 0)),                 # b1
            pl.BlockSpec((Cm, C_out), lambda i: (0, 0)),             # W2^T
            pl.BlockSpec((1, C_out), lambda i: (0, 0)),              # b2
        ],
        out_specs=pl.BlockSpec((nb, C_out, TV), lambda i: (i, 0, 0)),
        compiler_params=pltpu.CompilerParams(
            dimension_semantics=("parallel",)),
    )(x_cl, at, wg_t, bg_r, w1_t, b1_r, w2_t, b2_r)

    return out_flat.reshape(N, C_out, T, V)        # free metadata reshape


def reference(x, A, wg, bg, w1, b1, w2, b2):
    # Pure-JAX reference of the PyTorch AGCNBlock forward (for verification).
    hp = jax.lax.Precision.HIGHEST
    g = jnp.einsum('nctv,vw->nctw', x, A, precision=hp)
    g = jnp.einsum('oc,nctv->notv', wg, g, precision=hp) + bg[None, :, None, None]
    g = jnp.maximum(g, 0.0)
    s = jnp.mean(g, axis=-1) + jnp.max(g, axis=-1)                    # (N, C_out, T)
    h = jnp.maximum(jnp.einsum('mc,nct->nmt', w1, s, precision=hp)
                    + b1[None, :, None], 0.0)
    att = jax.nn.sigmoid(jnp.einsum('om,nmt->not', w2, h, precision=hp)
                         + b2[None, :, None])
    return jnp.maximum(g * att[..., None], 0.0)                       # (N, C_out, T, V)


if __name__ == "__main__":
    N, C_in, C_out, T, V = 4, 16, 32, 16, 16
    Cm = C_out // 8

    key = jax.random.PRNGKey(0)
    kx, ka, k1, k2, k3, k4, k5, k6 = jax.random.split(key, 8)

    x = jax.random.normal(kx, (N, C_in, T, V), dtype=jnp.float32)
    A = jax.random.uniform(ka, (V, V), jnp.float32, -0.25, 0.25)

    bnd_g = 1.0 / (C_in ** 0.5)
    wg = jax.random.uniform(k1, (C_out, C_in), jnp.float32, -bnd_g, bnd_g)
    bg = jax.random.uniform(k2, (C_out,), jnp.float32, -bnd_g, bnd_g)
    bnd_1 = 1.0 / (C_out ** 0.5)
    w1 = jax.random.uniform(k3, (Cm, C_out), jnp.float32, -bnd_1, bnd_1)
    b1 = jax.random.uniform(k4, (Cm,), jnp.float32, -bnd_1, bnd_1)
    bnd_2 = 1.0 / (Cm ** 0.5)
    w2 = jax.random.uniform(k5, (C_out, Cm), jnp.float32, -bnd_2, bnd_2)
    b2 = jax.random.uniform(k6, (C_out,), jnp.float32, -bnd_2, bnd_2)

    out = agcn_block(x, A, wg, bg, w1, b1, w2, b2)
    out = jax.block_until_ready(out)

    ref = reference(x, A, wg, bg, w1, b1, w2, b2)
    assert out.shape == (N, C_out, T, V), out.shape
    max_err = float(jnp.max(jnp.abs(out - ref)))
    assert jnp.allclose(out, ref, atol=1e-3, rtol=1e-3), f"mismatch: {max_err}"

    print("KERNEL_OK")
</pallas_src>

<mosaic_0001>
module attributes {stable_mosaic.version = 11 : i64} {
  func.func @agcn_block_kernel(%arg0: i32, %arg1: memref<2x16x16x16xf32, #tpu.memory_space<vmem>>, %arg2: memref<16x16xf32, #tpu.memory_space<vmem>>, %arg3: memref<16x32xf32, #tpu.memory_space<vmem>>, %arg4: memref<1x32xf32, #tpu.memory_space<vmem>>, %arg5: memref<32x4xf32, #tpu.memory_space<vmem>>, %arg6: memref<1x4xf32, #tpu.memory_space<vmem>>, %arg7: memref<4x32xf32, #tpu.memory_space<vmem>>, %arg8: memref<1x32xf32, #tpu.memory_space<vmem>>, %arg9: memref<2x32x256xf32, #tpu.memory_space<vmem>>) attributes {dimension_semantics = [#tpu.dimension_semantics<parallel>], iteration_bounds = array<i64: 2>, scalar_prefetch = 0 : i64, scratch_operands = 0 : i64, tpu.core_type = #tpu.core_type<tc>, window_params = [{transform_indices = @transform_0, window_bounds = array<i64: 2, 16, 16, 16>}, {pipeline_mode = #tpu.pipeline_mode<synchronous>, transform_indices = @transform_1, window_bounds = array<i64: 16, 16>}, {pipeline_mode = #tpu.pipeline_mode<synchronous>, transform_indices = @transform_2, window_bounds = array<i64: 16, 32>}, {pipeline_mode = #tpu.pipeline_mode<synchronous>, transform_indices = @transform_3, window_bounds = array<i64: 1, 32>}, {pipeline_mode = #tpu.pipeline_mode<synchronous>, transform_indices = @transform_4, window_bounds = array<i64: 32, 4>}, {pipeline_mode = #tpu.pipeline_mode<synchronous>, transform_indices = @transform_5, window_bounds = array<i64: 1, 4>}, {pipeline_mode = #tpu.pipeline_mode<synchronous>, transform_indices = @transform_6, window_bounds = array<i64: 4, 32>}, {pipeline_mode = #tpu.pipeline_mode<synchronous>, transform_indices = @transform_7, window_bounds = array<i64: 1, 32>}, {transform_indices = @transform_8, window_bounds = array<i64: 2, 32, 256>}]} {
    %c0 = arith.constant 0 : index
    %c0_0 = arith.constant 0 : index
    %0 = vector.load %arg2[%c0, %c0_0] : memref<16x16xf32, #tpu.memory_space<vmem>>, vector<16x16xf32>
    %c0_1 = arith.constant 0 : index
    %c0_2 = arith.constant 0 : index
    %1 = vector.load %arg3[%c0_1, %c0_2] : memref<16x32xf32, #tpu.memory_space<vmem>>, vector<16x32xf32>
    %c0_3 = arith.constant 0 : index
    %c0_4 = arith.constant 0 : index
    %2 = vector.load %arg4[%c0_3, %c0_4] : memref<1x32xf32, #tpu.memory_space<vmem>>, vector<1x32xf32>
    %c0_5 = arith.constant 0 : index
    %c0_6 = arith.constant 0 : index
    %3 = vector.load %arg5[%c0_5, %c0_6] : memref<32x4xf32, #tpu.memory_space<vmem>>, vector<32x4xf32>
    %c0_7 = arith.constant 0 : index
    %c0_8 = arith.constant 0 : index
    %4 = vector.load %arg6[%c0_7, %c0_8] : memref<1x4xf32, #tpu.memory_space<vmem>>, vector<1x4xf32>
    %c0_9 = arith.constant 0 : index
    %c0_10 = arith.constant 0 : index
    %5 = vector.load %arg7[%c0_9, %c0_10] : memref<4x32xf32, #tpu.memory_space<vmem>>, vector<4x32xf32>
    %c0_11 = arith.constant 0 : index
    %c0_12 = arith.constant 0 : index
    %6 = vector.load %arg8[%c0_11, %c0_12] : memref<1x32xf32, #tpu.memory_space<vmem>>, vector<1x32xf32>
    %c0_13 = arith.constant 0 : index
    %c0_14 = arith.constant 0 : index
    %c0_15 = arith.constant 0 : index
    %c0_16 = arith.constant 0 : index
    %7 = vector.load %arg1[%c0_13, %c0_14, %c0_15, %c0_16] : memref<2x16x16x16xf32, #tpu.memory_space<vmem>>, vector<2x16x16x16xf32>
    %8 = vector.shape_cast %7 : vector<2x16x16x16xf32> to vector<32x16x16xf32>
    %9 = vector.shape_cast %0 : vector<16x16xf32> to vector<1x16x16xf32>
    %10 = vector.broadcast %9 : vector<1x16x16xf32> to vector<32x16x16xf32>
    "tpu.trace_start"() <{level = 10 : i32, message = "bwv,bvc->bwc"}> : () -> ()
    %cst = arith.constant dense<0.000000e+00> : vector<32x16x16xf32>
    %11 = tpu.matmul %10, %8, %cst {dimension_numbers = #tpu.dot_dimension_numbers<[2], [1], [1], [2], [0, 0, 0, 1, 1, 2], [0], [0]>} : vector<32x16x16xf32>, vector<32x16x16xf32>, vector<32x16x16xf32> -> vector<32x16x16xf32>
    "tpu.trace_stop"() : () -> ()
    %12 = vector.shape_cast %11 : vector<32x16x16xf32> to vector<512x16xf32>
    %cst_17 = arith.constant dense<0.000000e+00> : vector<512x32xf32>
    %13 = tpu.matmul %12, %1, %cst_17 {dimension_numbers = #tpu.dot_dimension_numbers<[1], [0], [0], [1], [0, 0, 1, 1], [], []>} : vector<512x16xf32>, vector<16x32xf32>, vector<512x32xf32> -> vector<512x32xf32>
    %14 = vector.broadcast %2 : vector<1x32xf32> to vector<512x32xf32>
    %15 = arith.addf %13, %14 : vector<512x32xf32>
    %cst_18 = arith.constant 0.000000e+00 : f32
    %16 = vector.broadcast %cst_18 : f32 to vector<512x32xf32>
    %17 = arith.maximumf %15, %16 : vector<512x32xf32>
    %18 = vector.shape_cast %17 : vector<512x32xf32> to vector<32x16x32xf32>
    %cst_19 = arith.constant dense<0.000000e+00> : vector<32x32xf32>
    %19 = vector.multi_reduction <add>, %18, %cst_19 [1] : vector<32x16x32xf32> to vector<32x32xf32>
    %cst_20 = arith.constant 6.250000e-02 : f32
    %20 = vector.broadcast %cst_20 : f32 to vector<32x32xf32>
    %21 = arith.mulf %19, %20 : vector<32x32xf32>
    %cst_21 = arith.constant dense<0xFF800000> : vector<32x32xf32>
    %22 = vector.multi_reduction <maximumf>, %18, %cst_21 [1] : vector<32x16x32xf32> to vector<32x32xf32>
    %23 = arith.addf %21, %22 : vector<32x32xf32>
    %cst_22 = arith.constant dense<0.000000e+00> : vector<32x4xf32>
    %24 = tpu.matmul %23, %3, %cst_22 {dimension_numbers = #tpu.dot_dimension_numbers<[1], [0], [0], [1], [0, 0, 1, 1], [], []>} : vector<32x32xf32>, vector<32x4xf32>, vector<32x4xf32> -> vector<32x4xf32>
    %25 = vector.broadcast %4 : vector<1x4xf32> to vector<32x4xf32>
    %26 = arith.addf %24, %25 : vector<32x4xf32>
    %cst_23 = arith.constant 0.000000e+00 : f32
    %27 = vector.broadcast %cst_23 : f32 to vector<32x4xf32>
    %28 = arith.maximumf %26, %27 : vector<32x4xf32>
    %cst_24 = arith.constant dense<0.000000e+00> : vector<32x32xf32>
    %29 = tpu.matmul %28, %5, %cst_24 {dimension_numbers = #tpu.dot_dimension_numbers<[1], [0], [0], [1], [0, 0, 1, 1], [], []>} : vector<32x4xf32>, vector<4x32xf32>, vector<32x32xf32> -> vector<32x32xf32>
    %30 = vector.broadcast %6 : vector<1x32xf32> to vector<32x32xf32>
    %31 = arith.addf %29, %30 : vector<32x32xf32>
    %32 = arith.negf %31 : vector<32x32xf32>
    %33 = math.exp %32 : vector<32x32xf32>
    %cst_25 = arith.constant 1.000000e+00 : f32
    %34 = vector.broadcast %cst_25 : f32 to vector<32x32xf32>
    %35 = arith.addf %34, %33 : vector<32x32xf32>
    %36 = arith.divf %34, %35 : vector<32x32xf32>
    %37 = vector.shape_cast %36 : vector<32x32xf32> to vector<32x1x32xf32>
    %38 = vector.broadcast %37 : vector<32x1x32xf32> to vector<32x16x32xf32>
    %39 = arith.mulf %18, %38 : vector<32x16x32xf32>
    %cst_26 = arith.constant 0.000000e+00 : f32
    %40 = vector.broadcast %cst_26 : f32 to vector<32x16x32xf32>
    %41 = arith.maximumf %39, %40 : vector<32x16x32xf32>
    %42 = vector.shape_cast %41 : vector<32x16x32xf32> to vector<2x256x32xf32>
    %43 = vector.extract_strided_slice %42 {offsets = [0, 0, 0], sizes = [1, 256, 32], strides = [1, 1, 1]} : vector<2x256x32xf32> to vector<1x256x32xf32>
    %44 = vector.shape_cast %43 : vector<1x256x32xf32> to vector<256x32xf32>
    %45 = tpu.transpose %44, [1, 0] : vector<256x32xf32> -> vector<32x256xf32>
    %c0_27 = arith.constant 0 : index
    %c0_28 = arith.constant 0 : index
    %c0_29 = arith.constant 0 : index
    %46 = vector.load %arg9[%c0_27, %c0_28, %c0_29] : memref<2x32x256xf32, #tpu.memory_space<vmem>>, vector<1x32x256xf32>
    %47 = vector.shape_cast %46 : vector<1x32x256xf32> to vector<32x256xf32>
    %48 = vector.shape_cast %45 : vector<32x256xf32> to vector<1x32x256xf32>
    tpu.vector_store %arg9[%c0_27, %c0_28, %c0_29], %48 {strides = array<i32>} : memref<2x32x256xf32, #tpu.memory_space<vmem>>, vector<1x32x256xf32>,
    %49 = vector.extract_strided_slice %42 {offsets = [1, 0, 0], sizes = [1, 256, 32], strides = [1, 1, 1]} : vector<2x256x32xf32> to vector<1x256x32xf32>
    %50 = vector.shape_cast %49 : vector<1x256x32xf32> to vector<256x32xf32>
    %51 = tpu.transpose %50, [1, 0] : vector<256x32xf32> -> vector<32x256xf32>
    %c1 = arith.constant 1 : index
    %c0_30 = arith.constant 0 : index
    %c0_31 = arith.constant 0 : index
    %52 = vector.load %arg9[%c1, %c0_30, %c0_31] : memref<2x32x256xf32, #tpu.memory_space<vmem>>, vector<1x32x256xf32>
    %53 = vector.shape_cast %52 : vector<1x32x256xf32> to vector<32x256xf32>
    %54 = vector.shape_cast %51 : vector<32x256xf32> to vector<1x32x256xf32>
    tpu.vector_store %arg9[%c1, %c0_30, %c0_31], %54 {strides = array<i32>} : memref<2x32x256xf32, #tpu.memory_space<vmem>>, vector<1x32x256xf32>,
    return
  }
  func.func @transform_0(%arg0: i32) -> (i32, i32, i32, i32) {
    %c0_i32 = arith.constant 0 : i32
    %c0_i32_0 = arith.constant 0 : i32
    %c0_i32_1 = arith.constant 0 : i32
    %c0_i32_2 = arith.constant 0 : i32
    return %arg0, %c0_i32, %c0_i32_0, %c0_i32_1 : i32, i32, i32, i32
  }
  func.func @transform_1(%arg0: i32) -> (i32, i32) {
    %c0_i32 = arith.constant 0 : i32
    %c0_i32_0 = arith.constant 0 : i32
    %c0_i32_1 = arith.constant 0 : i32
    return %c0_i32, %c0_i32_0 : i32, i32
  }
  func.func @transform_2(%arg0: i32) -> (i32, i32) {
    %c0_i32 = arith.constant 0 : i32
    %c0_i32_0 = arith.constant 0 : i32
    %c0_i32_1 = arith.constant 0 : i32
    return %c0_i32, %c0_i32_0 : i32, i32
  }
  func.func @transform_3(%arg0: i32) -> (i32, i32) {
    %c0_i32 = arith.constant 0 : i32
    %c0_i32_0 = arith.constant 0 : i32
    %c0_i32_1 = arith.constant 0 : i32
    return %c0_i32, %c0_i32_0 : i32, i32
  }
  func.func @transform_4(%arg0: i32) -> (i32, i32) {
    %c0_i32 = arith.constant 0 : i32
    %c0_i32_0 = arith.constant 0 : i32
    %c0_i32_1 = arith.constant 0 : i32
    return %c0_i32, %c0_i32_0 : i32, i32
  }
  func.func @transform_5(%arg0: i32) -> (i32, i32) {
    %c0_i32 = arith.constant 0 : i32
    %c0_i32_0 = arith.constant 0 : i32
    %c0_i32_1 = arith.constant 0 : i32
    return %c0_i32, %c0_i32_0 : i32, i32
  }
  func.func @transform_6(%arg0: i32) -> (i32, i32) {
    %c0_i32 = arith.constant 0 : i32
    %c0_i32_0 = arith.constant 0 : i32
    %c0_i32_1 = arith.constant 0 : i32
    return %c0_i32, %c0_i32_0 : i32, i32
  }
  func.func @transform_7(%arg0: i32) -> (i32, i32) {
    %c0_i32 = arith.constant 0 : i32
    %c0_i32_0 = arith.constant 0 : i32
    %c0_i32_1 = arith.constant 0 : i32
    return %c0_i32, %c0_i32_0 : i32, i32
  }
  func.func @transform_8(%arg0: i32) -> (i32, i32, i32) {
    %c0_i32 = arith.constant 0 : i32
    %c0_i32_0 = arith.constant 0 : i32
    %c0_i32_1 = arith.constant 0 : i32
    return %arg0, %c0_i32, %c0_i32_0 : i32, i32, i32
  }
}

</mosaic_0001>

<bundles_post_ra>
// kernel: tpu_custom_call.1
= control target key start
LH: loop header
LB: loop body
LE: loop exit
PB: predicated region body
PF: predicated region fallthrough
CT: control target
= control target key end

     0   :  { %13 = vsyncpa [#allocation3], 0  ;;  %s4583_s0 = inlined_call_operand.hbm [shape: f32[4,16,16,16], index: 0, kind: input, shape index: {}]   ;;  %s4584_s1 = inlined_call_operand.vmem [shape: f32[16,16], index: 1, kind: input, shape index: {}]   ;;  %s4585_s2 = inlined_call_operand.vmem [shape: f32[16,32], index: 2, kind: input, shape index: {}]   ;;  %s4586_s3 = inlined_call_operand.vmem [shape: f32[1,32], index: 3, kind: input, shape index: {}]   ;;  %s4587_s4 = inlined_call_operand.vmem [shape: f32[32,4], index: 4, kind: input, shape index: {}]   ;;  %s4588_s5 = inlined_call_operand.vmem [shape: f32[1,4], index: 5, kind: input, shape index: {}]   ;;  %s4589_s6 = inlined_call_operand.vmem [shape: f32[4,32], index: 6, kind: input, shape index: {}]   ;;  %s4590_s7 = inlined_call_operand.vmem [shape: f32[1,32], index: 7, kind: input, shape index: {}]   ;;  %s4591_s8 = inlined_call_operand.hbm [shape: f32[4,32,256], index: 8, kind: output, shape index: {}]  }
   0x1   :  { %15 = vsyncpa [#allocation3 + $0x1], 0 }
   0x2   :  { %16 = vsyncpa [#allocation4], 0 }
   0x3   :  { %18 = vsyncpa [#allocation4 + $0x1], 0  ;;  %s3344_s27 = smov 0   ;;  %s3346_s28 = smov 0  }
   0x4   :  { %s3348_s29 = smov 0   ;;  %s3350_s30 = smov 0  }
   0x5 LB: > { %4642 = sst [smem:[#allocation8_spill]] %s3289_s29  ;;  %s3365_s9 = sadd.s32 4294967295, %s3293_s30   ;;  %s3293_s30 = sphi %s3350_s30, %s4753_s30   ;;  %s3289_s29 = sphi %s3348_s29, %s4750_s29   ;;  %s3285_s28 = sphi %s3346_s28, %s4752_s28   ;;  %s3281_s27 = sphi %s3344_s27, %s4751_s27  }
   0x6   : > { %s2952_s10 = sadd.s32 4294967294, %s3293_s30   ;;  %s3369_s11 = sadd.s32 1, %s3293_s30  }
   0x7   : > { %s31_s12 = sadd.s32 1, %s3289_s29  ;;  %s28_s13 = ssub.s32 %s3293_s30, %s3369_s11 }
   0x8   : > { %p38_p0 = scmp.ne.s32.totalorder %s3289_s29, %s3285_s28  ;;  %p29_p1 = scmp.eq.s32.totalorder %s28_s13, 0 }
   0x9   : > { %p39_p2 = scmp.eq.s32.totalorder %s3293_s30, 0  ;;  %p44_p3 = scmp.ne.s32.totalorder %s3285_s28, %s3281_s27 }
   0xa   : > { %p45_p4 = scmp.eq.s32.totalorder %s3365_s9, 0  ;;  %p215_p7 = scmp.eq.s32.totalorder %s3365_s9, 1 }
   0xb   : > { %s3381_s14 = scalar_select %p29_p1, %s3289_s29, %s31_s12  }
   0xc   : > { %p3383_p5 = por %p39_p2, %p38_p0  ;;  %p3387_p6 = por %p45_p4, %p44_p3 }
   0xd   : > { %4643 = sst [smem:[#allocation9_spill]] %s3381_s14  ;;  %p221_p8 = scmp.eq.s32.totalorder %s2952_s10, 1 }
   0xe   : > { %p3139_p10 = scmp.lt.s32.totalorder %s3293_s30, 2  ;;  %p3394_p11 = por %p215_p7, %p38_p0 }
   0xf   : > { %p3398_p12 = por %p221_p8, %p44_p3  ;;  %s262_s19 = sand.u32 1, %s3289_s29  }
  0x10   : > { %s3118_s20 = sshll.u32 %s3293_s30, 9  ;;  %s2955_s21 = sshll.u32 %s262_s19, 9 }
  0x11   : > { %s272_s24 = scalar_lea.hbm %s4583_s0, %s3118_s20  ;;  %s266_s26 = scalar_lea.vmem [#allocation2], %s2955_s21 }
  0x12   : > { %s273_s25 = sshll.u32 %s272_s24, 4  ;;  %s275_s10 = sshll.u32 %s266_s26, 4  ;;  %s274_s25 = int_to_ptr.hbm [resolvable:$true] %s273_s25  ;;  %s276_s10 = int_to_ptr.vmem [resolvable:$true] %s275_s10 }
  0x13   : > { %p3409_p13 = pnand %p3139_p10, %p3383_p5  ;;  %p2959_p0 = scmp.ge.s32.totalorder %s3293_s30, 1 }
  0x14   : > { %p283_p1 = scmp.lt.s32.totalorder %s3293_s30, 3  ;;  %s263_s13 = scalar_lea.sflag [#allocation3], %s262_s19 }
  0x15   : > { %s3197_s14 = sshra.s32 %s274_s25, 4  ;;  %p3201_p3 = pneg %p3409_p13  ;;  %s3198_s14 = int_to_ptr.hbm [resolvable:$true] %s3197_s14 }
  0x16   : > { %s3199_s29 = scalar_lea.hbm %s3198_s14, 512  ;;  %s3204_s15 = scalar_lea.hbm %s4583_s0, 1024 }
  0x17   : > { %p3200_p2 = scmp.ne.s32.totalorder %s3198_s14, %s3199_s29  ;;  %p3205_p5 = scmp.lt.s32.totalorder %s3198_s14, %s4583_s0 }
  0x18   : > { %p3206_p8 = scmp.lt.s32.totalorder %s3204_s15, %s3199_s29 }
  0x19   : > { %p3202_p4 = pnand %p3201_p3, %p3200_p2 }
  0x1a   : > { %p3207_p10 = por %p3206_p8, %p3205_p5 }
  0x1b   : > { %p3203_p7 = pneg %p3202_p4 }
  0x1d   : > { %p3208_p9 = pnand %p3207_p10, %p3203_p7 }
  0x1f   : > { %3211 = shalt.err (!%p3208_p9)
}
  0x20   : > { %s3295_s19 = smov 128   ;;  %s3296_s24 = smov 8  }
  0x21   : > { %3134 = dma.hbm_to_vmem [thread:$0]  (!%p3409_p13), %s274_s25, 8192, %s276_s10, %s263_s13, %s3295_s19, %s3295_s19, %s3296_s24  }
  0x22   : > { %p284_p2 = pnand %p2959_p0, %p283_p1 }
  0x24   : > { %287 = sbr.rel (%p284_p2) target bundleno = 1098 (0x44a), region = 52 }
  0x29   : > { %s3430_s26 = sand.u32 1, %s3285_s28  }
  0x2a   : > { %s2960_s29 = sshll.u32 %s3430_s26, 9  ;;  %s290_s14 = scalar_lea.sflag [#allocation3], %s3430_s26 }
  0x2b   : > { %s3434_s20 = scalar_lea.vmem [#allocation2], %s2960_s29 }
  0x2c   : > { %3272 = dma.done.wait (%p3387_p6), %s290_s14, 8192  }
  0x2d   : > { %3274 = vsyncadd (%p3387_p6), %s290_s14, 4294959104  ;;  %v342_v0 = vld [vmem:[%s3434_s20 + $0x8] sm:$0xff]  ;;  %v344_v1 = vld [vmem:[%s3434_s20 + $0x18] sm:$0xff]  ;;  %vm405_vm0 = vcmask 130048   ;;  %vm1616_vm1 = vcmask 261120   ;;  %vm2292_vm2 = vcmask 1041409  }
  0x2e   : > { %v348_v2 = vld [vmem:[%s3434_s20 + $0x38] sm:$0xff]  ;;  %426 = vmatpush.msra.mxu0 %v342_v0  ;;  %449 = vmatpush.msra.mxu1 %v344_v1  ;;  %v341_v3 = vld [vmem:[%s3434_s20] sm:$0xff]  ;;  %v343_v4 = vld [vmem:[%s3434_s20 + $0x10] sm:$0xff]  ;;  %vm2294_vm3 = vcmask 1042434   ;;  %vm2296_vm4 = vcmask 1043459   ;;  %vm2298_vm5 = vcmask 1044484  }
  0x2f   : > { %v347_v5 = vld [vmem:[%s3434_s20 + $0x30] sm:$0xff]  ;;  %495 = vmatpush.msra.mxu3 %v348_v2  ;;  %v3449_v6 = vld [vmem:[%s4584_s1] sm:$0xff]  ;;  %v350_v7 = vld [vmem:[%s3434_s20 + $0x48] sm:$0xff]  ;;  %vm2300_vm6 = vcmask 1045509   ;;  %vm2302_vm7 = vcmask 1046534   ;;  %vm2304_vm8 = vcmask 1047559  }
  0x30   : > { %427 = vmatpush.msra.mxu0 %v341_v3  ;;  %450 = vmatpush.msra.mxu1 %v343_v4  ;;  %v346_v8 = vld [vmem:[%s3434_s20 + $0x28] sm:$0xff]  ;;  %v352_v9 = vld [vmem:[%s3434_s20 + $0x58] sm:$0xff]  ;;  %v349_v11 = vld [vmem:[%s3434_s20 + $0x40] sm:$0xff]  ;;  %vm2384_vm9 = vcmask 1043456   ;;  %vm2371_vm10 = vcmask 31744   ;;  %s2961_s14 = sshll.u32 %s3430_s26, 7 }
  0x31   : > { %496 = vmatpush.msra.mxu3 %v347_v5  ;;  %2962 = vmatmul.msk.f32.vlgmr.msra.gmra.mxu0 %vm405_vm0, %v3449_v6  ;;  %v356_v10 = vld [vmem:[%s3434_s20 + $0x78] sm:$0xff]  ;;  %v345_v12 = vld [vmem:[%s3434_s20 + $0x20] sm:$0xff]  ;;  %v351_v13 = vld [vmem:[%s3434_s20 + $0x50] sm:$0xff]  ;;  %s3120_s16 = sshll.u32 %s3365_s9, 7  ;;  %s2863_s15 = scalar_lea.sflag [#allocation4], %s3430_s26 }
  0x32   : > { %2964 = vmatmul.msk.f32.vlgmr.msra.gmra.mxu1 %vm405_vm0, %v3449_v6  ;;  %2968 = vmatmul.msk.f32.vlgmr.msra.gmra.mxu3 %vm405_vm0, %v3449_v6  ;;  %v3467_v14 = vld [vmem:[%s4584_s1 + $0x8] sm:$0xff]  ;;  %v355_v15 = vld [vmem:[%s3434_s20 + $0x70] sm:$0xff]  ;;  %v360_v18 = vld [vmem:[%s3434_s20 + $0x98] sm:$0xff]  ;;  %s2875_s12 = scalar_lea.hbm %s4591_s8, %s3120_s16  ;;  %s3247_s24 = scalar_lea.hbm %s4591_s8, 256 }
  0x33   : > { %518 = vmatpush.msrb.mxu0 %v350_v7  ;;  %472 = vmatpush.msra.mxu2 %v346_v8  ;;  %v358_v16 = vld [vmem:[%s3434_s20 + $0x88] sm:$0xff]  ;;  %v364_v19 = vld [vmem:[%s3434_s20 + $0xb8] sm:$0xff]  ;;  %v357_v20 = vld [vmem:[%s3434_s20 + $0x80] sm:$0xff]  ;;  %s2878_s21 = sshll.u32 %s2875_s12, 4  ;;  %s2879_s21 = int_to_ptr.hbm [resolvable:$true] %s2878_s21 }
  0x34   : > { %541 = vmatpush.msrb.mxu1 %v352_v9  ;;  %587 = vmatpush.msrb.mxu3 %v356_v10  ;;  %v354_v17 = vld [vmem:[%s3434_s20 + $0x68] sm:$0xff]  ;;  %v353_v21 = vld [vmem:[%s3434_s20 + $0x60] sm:$0xff]  ;;  %v359_v22 = vld [vmem:[%s3434_s20 + $0x90] sm:$0xff]  ;;  %s3241_s22 = sshra.s32 %s2879_s21, 4  ;;  %s3242_s22 = int_to_ptr.hbm [resolvable:$true] %s3241_s22 }
  0x35   : > { %519 = vmatpush.msrb.mxu0 %v349_v11  ;;  %473 = vmatpush.msra.mxu2 %v345_v12  ;;  %v363_v23 = vld [vmem:[%s3434_s20 + $0xb0] sm:$0xff]  ;;  %v362_v24 = vld [vmem:[%s3434_s20 + $0xa8] sm:$0xff]  ;;  %v361_v25 = vld [vmem:[%s3434_s20 + $0xa0] sm:$0xff]  ;;  %s3243_s23 = scalar_lea.hbm %s3242_s22, 128  ;;  %p3248_p0 = scmp.lt.s32.totalorder %s3242_s22, %s4591_s8 }
  0x36   : > { %2966 = vmatmul.msk.f32.vlgmr.msra.gmra.mxu2 %vm405_vm0, %v3449_v6  ;;  %542 = vmatpush.msrb.mxu1 %v351_v13  ;;  %v366_v26 = vld [vmem:[%s3434_s20 + $0xc8] sm:$0xff]  ;;  %v372_v27 = vld [vmem:[%s3434_s20 + $0xf8] sm:$0xff]  ;;  %v365_v28 = vld [vmem:[%s3434_s20 + $0xc0] sm:$0xff]  ;;  %p3244_p6 = scmp.ne.s32.totalorder %s3242_s22, %s3243_s23  ;;  %p3249_p1 = scmp.lt.s32.totalorder %s3247_s24, %s3243_s23 }
  0x37   : > { %588 = vmatpush.msrb.mxu3 %v355_v15  ;;  %610 = vmatpush.msra.mxu0 %v358_v16  ;;  %v371_v29 = vld [vmem:[%s3434_s20 + $0xf0] sm:$0xff]  ;;  %v368_v30 = vld [vmem:[%s3434_s20 + $0xd8] sm:$0xff]  ;;  %v374_v32 = vld [vmem:[%s3434_s20 + $0x108] sm:$0xff] }
  0x38   : > { %564 = vmatpush.msrb.mxu2 %v354_v17  ;;  %633 = vmatpush.msra.mxu1 %v360_v18  ;;  %v367_v31 = vld [vmem:[%s3434_s20 + $0xd0] sm:$0xff]  ;;  %v380_v33 = vld [vmem:[%s3434_s20 + $0x138] sm:$0xff]  ;;  %v373_v34 = vld [vmem:[%s3434_s20 + $0x100] sm:$0xff]  ;;  %p3245_p9 = pnand %p3244_p6, %p3394_p11  ;;  %p3250_p3 = por %p3249_p1, %p3248_p0 }
  0x39   : > { %2963 = vmatmul.msk.f32.gmra.mxu0 %vm405_vm0, %v3467_v14  ;;  %679 = vmatpush.msra.mxu3 %v364_v19  ;;  %v379_v35 = vld [vmem:[%s3434_s20 + $0x130] sm:$0xff]  ;;  %v370_v36 = vld [vmem:[%s3434_s20 + $0xe8] sm:$0xff]  ;;  %v369_v37 = vld [vmem:[%s3434_s20 + $0xe0] sm:$0xff] }
  0x3a   : > { %2965 = vmatmul.msk.f32.gmra.mxu1 %vm405_vm0, %v3467_v14  ;;  %2969 = vmatmul.msk.f32.gmra.mxu3 %vm405_vm0, %v3467_v14  ;;  %v376_v38 = vld [vmem:[%s3434_s20 + $0x118] sm:$0xff]  ;;  %v375_v39 = vld [vmem:[%s3434_s20 + $0x110] sm:$0xff]  ;;  %v382_v40 = vld [vmem:[%s3434_s20 + $0x148] sm:$0xff]  ;;  %p3246_p13 = pneg %p3245_p9 }
  0x3b   : > { %611 = vmatpush.msra.mxu0 %v357_v20  ;;  %565 = vmatpush.msrb.mxu2 %v353_v21  ;;  %v388_v41 = vld [vmem:[%s3434_s20 + $0x178] sm:$0xff]  ;;  %v381_v42 = vld [vmem:[%s3434_s20 + $0x140] sm:$0xff]  ;;  %v387_v43 = vld [vmem:[%s3434_s20 + $0x170] sm:$0xff] }
  0x3c   : > { %634 = vmatpush.msra.mxu1 %v359_v22  ;;  %680 = vmatpush.msra.mxu3 %v363_v23  ;;  %v378_v44 = vld [vmem:[%s3434_s20 + $0x128] sm:$0xff]  ;;  %v377_v45 = vld [vmem:[%s3434_s20 + $0x120] sm:$0xff]  ;;  %v384_v47 = vld [vmem:[%s3434_s20 + $0x158] sm:$0xff]  ;;  %p3251_p4 = pnand %p3250_p3, %p3246_p13 }
  0x3d   : > { %656 = vmatpush.msra.mxu2 %v362_v24  ;;  %v390_v46 = vld [vmem:[%s3434_s20 + $0x188] sm:$0xff]  ;;  %v389_v48 = vld [vmem:[%s3434_s20 + $0x180] sm:$0xff]  ;;  %v383_v49 = vld [vmem:[%s3434_s20 + $0x150] sm:$0xff] }
  0x3e   : > { %2967 = vmatmul.msk.f32.gmra.mxu2 %vm405_vm0, %v3467_v14  ;;  %v386_v50 = vld [vmem:[%s3434_s20 + $0x168] sm:$0xff]  ;;  %v385_v51 = vld [vmem:[%s3434_s20 + $0x160] sm:$0xff]  ;;  %v392_v54 = vld [vmem:[%s3434_s20 + $0x198] sm:$0xff] }
  0x3f   : > { %657 = vmatpush.msra.mxu2 %v361_v25  ;;  %v398_v52 = vld [vmem:[%s3434_s20 + $0x1c8] sm:$0xff]  ;;  %v397_v53 = vld [vmem:[%s3434_s20 + $0x1c0] sm:$0xff]  ;;  %v391_v55 = vld [vmem:[%s3434_s20 + $0x190] sm:$0xff] }
  0x40   : > { %v394_v56 = vld [vmem:[%s3434_s20 + $0x1a8] sm:$0xff]  ;;  %v393_v58 = vld [vmem:[%s3434_s20 + $0x1a0] sm:$0xff]  ;;  %v400_v60 = vld [vmem:[%s3434_s20 + $0x1d8] sm:$0xff] }
  0x41   : > { %2970 = vmatmul.msk.f32.vlgmr.msrb.gmra.mxu0 %vm405_vm0, %v3449_v6  ;;  %v3604_v57 = vld [vmem:[%s4585_s2 + $0x8] sm:$0xff]  ;;  %v3612_v59 = vld [vmem:[%s4585_s2] sm:$0xff]  ;;  %v396_v61 = vld [vmem:[%s3434_s20 + $0x1b8] sm:$0xff] }
  0x42   : > { %2972 = vmatmul.msk.f32.vlgmr.msrb.gmra.mxu1 %vm405_vm0, %v3449_v6  ;;  %2976 = vmatmul.msk.f32.vlgmr.msrb.gmra.mxu3 %vm405_vm0, %v3449_v6  ;;  %v399_v62 = vld [vmem:[%s3434_s20 + $0x1d0] sm:$0xff]  ;;  %v402_v7 = vld [vmem:[%s3434_s20 + $0x1e8] sm:$0xff]  ;;  %v401_v10 = vld [vmem:[%s3434_s20 + $0x1e0] sm:$0xff] }
  0x43   : > { %702 = vmatpush.msrb.mxu0 %v366_v26  ;;  %771 = vmatpush.msrb.mxu3 %v372_v27  ;;  %v395_v63 = vld [vmem:[%s3434_s20 + $0x1b0] sm:$0xff]  ;;  %v404_v22 = vld [vmem:[%s3434_s20 + $0x1f8] sm:$0xff] }
  0x44   : > { %725 = vmatpush.msrb.mxu1 %v368_v30  ;;  %v403_v23 = vld [vmem:[%s3434_s20 + $0x1f0] sm:$0xff]  ;;  %s4526_s20 = scalar_lea.vmem [#allocation5], %s2961_s14 }
  0x45   : > { %703 = vmatpush.msrb.mxu0 %v365_v28  ;;  %772 = vmatpush.msrb.mxu3 %v371_v29  ;;  %s2876_s13 = sshll.u32 %s4526_s20, 4  ;;  %s2877_s13 = int_to_ptr.vmem [resolvable:$true] %s2876_s13 }
  0x46   : > { %2974 = vmatmul.msk.f32.vlgmr.msrb.gmra.mxu2 %vm405_vm0, %v3449_v6  ;;  %726 = vmatpush.msrb.mxu1 %v367_v31 }
  0x47   : > { %748 = vmatpush.msrb.mxu2 %v370_v36 }
  0x49   : > { %2971 = vmatmul.msk.f32.gmra.mxu0 %vm405_vm0, %v3467_v14  ;;  %749 = vmatpush.msrb.mxu2 %v369_v37 }
  0x4a   : > { %2973 = vmatmul.msk.f32.gmra.mxu1 %vm405_vm0, %v3467_v14  ;;  %2977 = vmatmul.msk.f32.gmra.mxu3 %vm405_vm0, %v3467_v14 }
  0x4e   : > { %2975 = vmatmul.msk.f32.gmra.mxu2 %vm405_vm0, %v3467_v14 }
  0x51   : > { %2978 = vmatmul.msk.f32.vlgmr.msra.gmra.mxu0 %vm405_vm0, %v3449_v6 }
  0x52   : > { %2980 = vmatmul.msk.f32.vlgmr.msra.gmra.mxu1 %vm405_vm0, %v3449_v6  ;;  %2984 = vmatmul.msk.f32.vlgmr.msra.gmra.mxu3 %vm405_vm0, %v3449_v6 }
  0x53   : > { %794 = vmatpush.msra.mxu0 %v374_v32  ;;  %863 = vmatpush.msra.mxu3 %v380_v33 }
  0x54   : > { %817 = vmatpush.msra.mxu1 %v376_v38 }
  0x55   : > { %795 = vmatpush.msra.mxu0 %v373_v34  ;;  %864 = vmatpush.msra.mxu3 %v379_v35 }
  0x56   : > { %2982 = vmatmul.msk.f32.vlgmr.msra.gmra.mxu2 %vm405_vm0, %v3449_v6  ;;  %818 = vmatpush.msra.mxu1 %v375_v39 }
  0x57   : > { %840 = vmatpush.msra.mxu2 %v378_v44 }
  0x59   : > { %2979 = vmatmul.msk.f32.gmra.mxu0 %vm405_vm0, %v3467_v14  ;;  %841 = vmatpush.msra.mxu2 %v377_v45 }
  0x5a   : > { %2981 = vmatmul.msk.f32.gmra.mxu1 %vm405_vm0, %v3467_v14  ;;  %2985 = vmatmul.msk.f32.gmra.mxu3 %vm405_vm0, %v3467_v14 }
  0x5e   : > { %2983 = vmatmul.msk.f32.gmra.mxu2 %vm405_vm0, %v3467_v14 }
  0x61   : > { %2986 = vmatmul.msk.f32.vlgmr.msrb.gmra.mxu0 %vm405_vm0, %v3449_v6 }
  0x62   : > { %2992 = vmatmul.msk.f32.vlgmr.msrb.gmra.mxu3 %vm405_vm0, %v3449_v6  ;;  %2988 = vmatmul.msk.f32.vlgmr.msrb.gmra.mxu1 %vm405_vm0, %v3449_v6 }
  0x63   : > { %886 = vmatpush.msrb.mxu0 %v382_v40  ;;  %955 = vmatpush.msrb.mxu3 %v388_v41 }
  0x64   : > { %909 = vmatpush.msrb.mxu1 %v384_v47 }
  0x65   : > { %887 = vmatpush.msrb.mxu0 %v381_v42  ;;  %956 = vmatpush.msrb.mxu3 %v387_v43 }
  0x66   : > { %2990 = vmatmul.msk.f32.vlgmr.msrb.gmra.mxu2 %vm405_vm0, %v3449_v6  ;;  %910 = vmatpush.msrb.mxu1 %v383_v49 }
  0x67   : > { %932 = vmatpush.msrb.mxu2 %v386_v50 }
  0x69   : > { %2987 = vmatmul.msk.f32.gmra.mxu0 %vm405_vm0, %v3467_v14  ;;  %933 = vmatpush.msrb.mxu2 %v385_v51 }
  0x6a   : > { %2993 = vmatmul.msk.f32.gmra.mxu3 %vm405_vm0, %v3467_v14  ;;  %2989 = vmatmul.msk.f32.gmra.mxu1 %vm405_vm0, %v3467_v14 }
  0x6e   : > { %2991 = vmatmul.msk.f32.gmra.mxu2 %vm405_vm0, %v3467_v14 }
  0x71   : > { %2994 = vmatmul.msk.f32.vlgmr.msra.gmra.mxu0 %vm405_vm0, %v3449_v6 }
  0x72   : > { %3000 = vmatmul.msk.f32.vlgmr.msra.gmra.mxu3 %vm405_vm0, %v3449_v6  ;;  %2996 = vmatmul.msk.f32.vlgmr.msra.gmra.mxu1 %vm405_vm0, %v3449_v6 }
  0x73   : > { %978 = vmatpush.msra.mxu0 %v390_v46  ;;  %1001 = vmatpush.msra.mxu1 %v392_v54 }
  0x74   : > { %1047 = vmatpush.msra.mxu3 %v396_v61 }
  0x75   : > { %979 = vmatpush.msra.mxu0 %v389_v48  ;;  %1002 = vmatpush.msra.mxu1 %v391_v55 }
  0x76   : > { %2998 = vmatmul.msk.f32.vlgmr.msra.gmra.mxu2 %vm405_vm0, %v3449_v6  ;;  %1048 = vmatpush.msra.mxu3 %v395_v63 }
  0x77   : > { %1024 = vmatpush.msra.mxu2 %v394_v56 }
  0x79   : > { %2995 = vmatmul.msk.f32.gmra.mxu0 %vm405_vm0, %v3467_v14  ;;  %1025 = vmatpush.msra.mxu2 %v393_v58 }
  0x7a   : > { %3001 = vmatmul.msk.f32.gmra.mxu3 %vm405_vm0, %v3467_v14  ;;  %2997 = vmatmul.msk.f32.gmra.mxu1 %vm405_vm0, %v3467_v14 }
  0x7e   : > { %2999 = vmatmul.msk.f32.gmra.mxu2 %vm405_vm0, %v3467_v14 }
  0x81   : > { %3002 = vmatmul.msk.f32.vlgmr.msrb.gmra.mxu0 %vm405_vm0, %v3449_v6 }
  0x82   : > { %3008 = vmatmul.msk.f32.vlgmr.msrb.gmra.mxu3 %vm405_vm0, %v3449_v6  ;;  %1070 = vmatpush.msrb.mxu0 %v398_v52 }
  0x83   : > { %3004 = vmatmul.msk.f32.vlgmr.msrb.gmra.mxu1 %vm405_vm0, %v3449_v6  ;;  %1139 = vmatpush.msrb.mxu3 %v404_v22 }
  0x84   : > { %1071 = vmatpush.msrb.mxu0 %v397_v53  ;;  %1093 = vmatpush.msrb.mxu1 %v400_v60 }
  0x85   : > { %1140 = vmatpush.msrb.mxu3 %v403_v23 }
  0x86   : > { %3006 = vmatmul.msk.f32.vlgmr.msrb.gmra.mxu2 %vm405_vm0, %v3449_v6  ;;  %1094 = vmatpush.msrb.mxu1 %v399_v62 }
  0x87   : > { %1116 = vmatpush.msrb.mxu2 %v402_v7 }
  0x89   : > { %3003 = vmatmul.msk.f32.gmra.mxu0 %vm405_vm0, %v3467_v14  ;;  %1117 = vmatpush.msrb.mxu2 %v401_v10 }
  0x8a   : > { %3009 = vmatmul.msk.f32.gmra.mxu3 %vm405_vm0, %v3467_v14 }
  0x8b   : > { %3005 = vmatmul.msk.f32.gmra.mxu1 %vm405_vm0, %v3467_v14 }
  0x8e   : > { %3007 = vmatmul.msk.f32.gmra.mxu2 %vm405_vm0, %v3467_v14 }
  0x91   : > { %3010 = vmatmul.msk.f32.vlgmr.msra.gmra.mxu0 %vm405_vm0, %v3449_v6 }
  0x92   : > { %1357 = vmatpush.msra.mxu0 %v3604_v57  ;;  %3016 = vmatmul.msk.f32.vlgmr.msra.gmra.mxu3 %vm405_vm0, %v3449_v6 }
  0x93   : > { %3012 = vmatmul.msk.f32.vlgmr.msra.gmra.mxu1 %vm405_vm0, %v3449_v6  ;;  %3123 = vmatpush.msra.mxu3 %v3604_v57 }
  0x94   : > { %1358 = vmatpush.msra.mxu0 %v3612_v59  ;;  %3121 = vmatpush.msra.mxu1 %v3604_v57 }
  0x95   : > { %3126 = vmatpush.msra.mxu3 %v3612_v59 }
  0x96   : > { %3014 = vmatmul.msk.f32.vlgmr.msra.gmra.mxu2 %vm405_vm0, %v3449_v6  ;;  %3124 = vmatpush.msra.mxu1 %v3612_v59 }
  0x97   : > { %3122 = vmatpush.msra.mxu2 %v3604_v57 }
  0x99   : > { %3011 = vmatmul.msk.f32.gmra.mxu0 %vm405_vm0, %v3467_v14  ;;  %3125 = vmatpush.msra.mxu2 %v3612_v59 }
  0x9a   : > { %3017 = vmatmul.msk.f32.gmra.mxu3 %vm405_vm0, %v3467_v14 }
  0x9b   : > { %3013 = vmatmul.msk.f32.gmra.mxu1 %vm405_vm0, %v3467_v14 }
  0x9e   : > { %3015 = vmatmul.msk.f32.gmra.mxu2 %vm405_vm0, %v3467_v14 }
  0xa1   : > { %3018 = vmatmul.msk.f32.vlgmr.msrb.gmra.mxu0 %vm405_vm0, %v3449_v6 }
  0xa2   : > { %3024 = vmatmul.msk.f32.vlgmr.msrb.gmra.mxu3 %vm405_vm0, %v3449_v6 }
  0xa3   : > { %3020 = vmatmul.msk.f32.vlgmr.msrb.gmra.mxu1 %vm405_vm0, %v3449_v6 }
  0xa6   : > { %3022 = vmatmul.msk.f32.vlgmr.msrb.gmra.mxu2 %vm405_vm0, %v3449_v6 }
  0xa9   : > { %3019 = vmatmul.msk.f32.gmra.mxu0 %vm405_vm0, %v3467_v14 }
  0xaa   : > { %3025 = vmatmul.msk.f32.gmra.mxu3 %vm405_vm0, %v3467_v14 }
  0xab   : > { %3021 = vmatmul.msk.f32.gmra.mxu1 %vm405_vm0, %v3467_v14 }
  0xae   : > { %v429_v0 = vpop.f32.mrf.mxu0  ;;  %3023 = vmatmul.msk.f32.gmra.mxu2 %vm405_vm0, %v3467_v14 }
  0xaf   : > { %v452_v1 = vpop.f32.mrf.mxu1 }
  0xb1   : > { %3026 = vmatmul.msk.f32.vlgmr.msra.gmra.mxu0 %vm405_vm0, %v429_v0  ;;  %v337_v0 = vld [vmem:[%s4587_s4 + $0x18] sm:$0xff] }
  0xb2   : > { %2347 = vmatpush.msrb.mxu1 %v337_v0 }
  0xb5   : > { %v498_v2 = vpop.f32.mrf.mxu3 }
  0xb6   : > { %v432_v3 = vpop.f32.mrf.mxu0 }
  0xb7   : > { %v455_v4 = vpop.f32.mrf.mxu1 }
  0xb9   : > { %3027 = vmatmul.msk.f32.gmra.mxu0 %vm405_vm0, %v432_v3  ;;  %v475_v5 = vpop.f32.mrf.mxu2 }
  0xbd   : > { %v501_v8 = vpop.f32.mrf.mxu3 }
  0xbe   : > { %v521_v9 = vpop.f32.mrf.mxu0 }
  0xbf   : > { %v544_v11 = vpop.f32.mrf.mxu1 }
  0xc1   : > { %3028 = vmatmul.msk.f32.gmra.mxu0 %vm405_vm0, %v452_v1  ;;  %v478_v12 = vpop.f32.mrf.mxu2  ;;  %v3749_v1 = vld [vmem:[%s4586_s3] ss:$0 sm:$0xff] }
  0xc5   : > { %v3653_v13 = vpop.f32.mrf.mxu3 }
  0xc6   : > { %v524_v15 = vpop.f32.mrf.mxu0 }
  0xc7   : > { %v547_v16 = vpop.f32.mrf.mxu1 }
  0xc9   : > { %3029 = vmatmul.msk.f32.gmra.mxu0 %vm405_vm0, %v455_v4  ;;  %v3658_v17 = vpop.f32.mrf.mxu2 }
  0xcd   : > { %v3660_v18 = vpop.f32.mrf.mxu3 }
  0xce   : > { %v3662_v19 = vpop.f32.mrf.mxu0 }
  0xcf   : > { %v636_v20 = vpop.f32.mrf.mxu1 }
  0xd0   : > { %3044 = vmatmul.msk.f32.vlgmr.msra.gmra.mxu1 %vm405_vm0, %v636_v20 }
  0xd1   : > { %3030 = vmatmul.msk.f32.gmra.mxu0 %vm405_vm0, %v475_v5  ;;  %v3666_v21 = vpop.f32.mrf.mxu2 }
  0xd5   : > { %v682_v24 = vpop.f32.mrf.mxu3 }
  0xd6   : > { %v3670_v25 = vpop.f32.mrf.mxu0 }
  0xd7   : > { %v639_v26 = vpop.f32.mrf.mxu1 }
  0xd8   : > { %3045 = vmatmul.msk.f32.gmra.mxu1 %vm405_vm0, %v639_v26 }
  0xd9   : > { %3031 = vmatmul.msk.f32.gmra.mxu0 %vm405_vm0, %v478_v12  ;;  %v659_v27 = vpop.f32.mrf.mxu2 }
  0xdd   : > { %v685_v28 = vpop.f32.mrf.mxu3 }
  0xde   : > { %v705_v29 = vpop.f32.mrf.mxu0 }
  0xdf   : > { %v728_v32 = vpop.f32.mrf.mxu1 }
  0xe0   : > { %3046 = vmatmul.msk.f32.gmra.mxu1 %vm405_vm0, %v659_v27 }
  0xe1   : > { %3032 = vmatmul.msk.f32.gmra.mxu0 %vm405_vm0, %v498_v2  ;;  %v662_v30 = vpop.f32.mrf.mxu2 }
  0xe5   : > { %v3682_v6 = vpop.f32.mrf.mxu3 }
  0xe6   : > { %v708_v31 = vpop.f32.mrf.mxu0 }
  0xe7   : > { %v731_v14 = vpop.f32.mrf.mxu1 }
  0xe8   : > { %3047 = vmatmul.msk.f32.gmra.mxu1 %vm405_vm0, %v662_v30 }
  0xe9   : > { %3033 = vmatmul.msk.f32.gmra.mxu0 %vm405_vm0, %v501_v8  ;;  %v751_v37 = vpop.f32.mrf.mxu2 }
  0xed   : > { %v3686_v33 = vpop.f32.mrf.mxu3 }
  0xee   : > { %v797_v34 = vpop.f32.mrf.mxu0 }
  0xef   : > { %3058 = vmatmul.msk.f32.vlgmr.msra.gmra.mxu2 %vm405_vm0, %v797_v34  ;;  %v820_v38 = vpop.f32.mrf.mxu1 }
  0xf0   : > { %3048 = vmatmul.msk.f32.gmra.mxu1 %vm405_vm0, %v682_v24 }
  0xf1   : > { %3034 = vmatmul.msk.f32.gmra.mxu0 %vm405_vm0, %v521_v9  ;;  %v754_v41 = vpop.f32.mrf.mxu2 }
  0xf5   : > { %v866_v35 = vpop.f32.mrf.mxu3 }
  0xf6   : > { %v800_v36 = vpop.f32.mrf.mxu0 }
  0xf7   : > { %3059 = vmatmul.msk.f32.gmra.mxu2 %vm405_vm0, %v800_v36  ;;  %v823_v42 = vpop.f32.mrf.mxu1 }
  0xf8   : > { %3049 = vmatmul.msk.f32.gmra.mxu1 %vm405_vm0, %v685_v28 }
  0xf9   : > { %3035 = vmatmul.msk.f32.gmra.mxu0 %vm405_vm0, %v524_v15  ;;  %v843_v45 = vpop.f32.mrf.mxu2 }
  0xfd   : > { %v869_v39 = vpop.f32.mrf.mxu3 }
  0xfe   : > { %v889_v40 = vpop.f32.mrf.mxu0 }
  0xff   : > { %3060 = vmatmul.msk.f32.gmra.mxu2 %vm405_vm0, %v820_v38 }
 0x100   : > { %3050 = vmatmul.msk.f32.gmra.mxu1 %vm405_vm0, %v705_v29  ;;  %v912_v47 = vpop.f32.mrf.mxu1 }
 0x101   : > { %3036 = vmatmul.msk.f32.gmra.mxu0 %vm405_vm0, %v544_v11  ;;  %v846_v49 = vpop.f32.mrf.mxu2 }
 0x105   : > { %v958_v43 = vpop.f32.mrf.mxu3 }
 0x106   : > { %3072 = vmatmul.msk.f32.vlgmr.msra.gmra.mxu3 %vm405_vm0, %v958_v43  ;;  %v892_v44 = vpop.f32.mrf.mxu0 }
 0x107   : > { %3061 = vmatmul.msk.f32.gmra.mxu2 %vm405_vm0, %v823_v42 }
 0x108   : > { %3051 = vmatmul.msk.f32.gmra.mxu1 %vm405_vm0, %v708_v31  ;;  %v915_v51 = vpop.f32.mrf.mxu1 }
 0x109   : > { %3037 = vmatmul.msk.f32.gmra.mxu0 %vm405_vm0, %v547_v16  ;;  %v935_v52 = vpop.f32.mrf.mxu2 }
 0x10d   : > { %v961_v46 = vpop.f32.mrf.mxu3 }
 0x10e   : > { %3073 = vmatmul.msk.f32.gmra.mxu3 %vm405_vm0, %v961_v46  ;;  %v981_v48 = vpop.f32.mrf.mxu0 }
 0x10f   : > { %3062 = vmatmul.msk.f32.gmra.mxu2 %vm405_vm0, %v843_v45 }
 0x110   : > { %3052 = vmatmul.msk.f32.gmra.mxu1 %vm405_vm0, %v728_v32  ;;  %v1004_v54 = vpop.f32.mrf.mxu1 }
 0x111   : > { %3038 = vmatmul.msk.f32.gmra.mxu0 %vm405_vm0, %v3658_v17  ;;  %v3722_v56 = vpop.f32.mrf.mxu2 }
 0x115   : > { %v1050_v2 = vpop.f32.mrf.mxu3 }
 0x116   : > { %3074 = vmatmul.msk.f32.gmra.mxu3 %vm405_vm0, %v981_v48  ;;  %v984_v50 = vpop.f32.mrf.mxu0 }
 0x117   : > { %3063 = vmatmul.msk.f32.gmra.mxu2 %vm405_vm0, %v846_v49 }
 0x118   : > { %3053 = vmatmul.msk.f32.gmra.mxu1 %vm405_vm0, %v731_v14  ;;  %v1007_v57 = vpop.f32.mrf.mxu1 }
 0x119   : > { %3039 = vmatmul.msk.f32.gmra.mxu0 %vm405_vm0, %v3666_v21  ;;  %v1027_v59 = vpop.f32.mrf.mxu2 }
 0x11d   : > { %v1053_v15 = vpop.f32.mrf.mxu3 }
 0x11e   : > { %3075 = vmatmul.msk.f32.gmra.mxu3 %vm405_vm0, %v984_v50  ;;  %v3712_v53 = vpop.f32.mrf.mxu0 }
 0x11f   : > { %3064 = vmatmul.msk.f32.gmra.mxu2 %vm405_vm0, %v866_v35 }
 0x120   : > { %3054 = vmatmul.msk.f32.gmra.mxu1 %vm405_vm0, %v751_v37  ;;  %v3739_v61 = vpop.f32.mrf.mxu1 }
 0x121   : > { %3040 = vmatmul.msk.f32.gmra.mxu0 %vm405_vm0, %v3653_v13  ;;  %v1030_v62 = vpop.f32.mrf.mxu2 }
 0x126   : > { %3076 = vmatmul.msk.f32.gmra.mxu3 %vm405_vm0, %v1004_v54  ;;  %v3719_v55 = vpop.f32.mrf.mxu0 }
 0x127   : > { %3065 = vmatmul.msk.f32.gmra.mxu2 %vm405_vm0, %v869_v39 }
 0x128   : > { %3055 = vmatmul.msk.f32.gmra.mxu1 %vm405_vm0, %v754_v41  ;;  %v3752_v4 = vpop.f32.mrf.mxu1 }
 0x129   : > { %3041 = vmatmul.msk.f32.gmra.mxu0 %vm405_vm0, %v3660_v18 }
 0x12e   : > { %3077 = vmatmul.msk.f32.gmra.mxu3 %vm405_vm0, %v1007_v57  ;;  %v1360_v58 = vpop.f32.mrf.mxu0 }
 0x12f   : > { %3066 = vmatmul.msk.f32.gmra.mxu2 %vm405_vm0, %v889_v40  ;;  %v1361_v5 = vadd.f32 %v3749_v1, %v1360_v58 }
 0x130   : > { %3056 = vmatmul.msk.f32.gmra.mxu1 %vm405_vm0, %v3682_v6 }
 0x131   : > { %3042 = vmatmul.msk.f32.gmra.mxu0 %vm405_vm0, %v3662_v19  ;;  %v3760_v10 = vmax.f32 %v1361_v5, 0.0 }
 0x133   : > { %v1617_v16 = vsel %vm1616_vm1, %v3760_v10, 0.0  ;;  %v1937_v23 = vsel %vm1616_vm1, %v3760_v10, -inf }
 0x136   : > { %3078 = vmatmul.msk.f32.gmra.mxu3 %vm405_vm0, %v1027_v59  ;;  %v1363_v60 = vpop.f32.mrf.mxu0  ;;  %v336_v59 = vld [vmem:[%s4587_s4 + $0x10] sm:$0xff] }
 0x137   : > { %3067 = vmatmul.msk.f32.gmra.mxu2 %vm405_vm0, %v892_v44  ;;  %v1364_v3 = vadd.f32 %v3749_v1, %v1363_v60  ;;  %2348 = vmatpush.msrb.mxu1 %v336_v59 }
 0x138   : > { %3057 = vmatmul.msk.f32.gmra.mxu1 %vm405_vm0, %v3686_v33 }
 0x139   : > { %3043 = vmatmul.msk.f32.gmra.mxu0 %vm405_vm0, %v3670_v25  ;;  %v3755_v7 = vmax.f32 %v1364_v3, 0.0 }
 0x13b   : > { %v1618_v12 = vsel %vm1616_vm1, %v3755_v7, 0.0  ;;  %v1938_v19 = vsel %vm1616_vm1, %v3755_v7, -inf }
 0x13c   : > { %v1619_v18 = vadd.f32 %v1618_v12, %v1617_v16  ;;  %v1939_v24 = vmax.f32 %v1937_v23, %v1938_v19 }
 0x13e   : > { %3079 = vmatmul.msk.f32.gmra.mxu3 %vm405_vm0, %v1030_v62  ;;  %v1366_v63 = vpop.f32.mrf.mxu0  ;;  %v1620_v27 = vrot.slane %v1619_v18, 4  ;;  %v1940_v30 = vrot.slane %v1939_v24, 4 }
 0x13f   : > { %3068 = vmatmul.msk.f32.gmra.mxu2 %vm405_vm0, %v912_v47  ;;  %v1367_v11 = vadd.f32 %v3749_v1, %v1366_v63 }
 0x140   : > { %v1621_v33 = vadd.f32 %v1620_v27, %v1619_v18  ;;  %v1941_v40 = vmax.f32 %v1939_v24, %v1940_v30 }
 0x141   : > { %v3769_v17 = vmax.f32 %v1367_v11, 0.0 }
 0x142   : > { %v1622_v44 = vrot.slane %v1621_v33, 2  ;;  %v1942_v11 = vrot.slane %v1941_v40, 2 }
 0x143   : > { %v1626_v25 = vsel %vm1616_vm1, %v3769_v17, 0.0  ;;  %v1946_v31 = vsel %vm1616_vm1, %v3769_v17, -inf }
 0x146   : > { %3080 = vmatmul.msk.f32.gmra.mxu3 %vm405_vm0, %v1050_v2  ;;  %v1369_v8 = vpop.f32.mrf.mxu0 }
 0x147   : > { %v1370_v9 = vadd.f32 %v3749_v1, %v1369_v8  ;;  %3069 = vmatmul.msk.f32.gmra.mxu2 %vm405_vm0, %v915_v51  ;;  %v3822_v8 = vpop.f32.mrf.mxu2 }
 0x149   : > { %v3765_v13 = vmax.f32 %v1370_v9, 0.0  ;;  %v1623_v9 = vadd.f32 %v1622_v44, %v1621_v33 }
 0x14b   : > { %v1627_v21 = vsel %vm1616_vm1, %v3765_v13, 0.0  ;;  %v1947_v29 = vsel %vm1616_vm1, %v3765_v13, -inf  ;;  %v1624_v24 = vrot.slane %v1623_v9, 1 }
 0x14c   : > { %v1628_v28 = vadd.f32 %v1627_v21, %v1626_v25  ;;  %v1948_v14 = vmax.f32 %v1946_v31, %v1947_v29  ;;  %v1943_v25 = vmax.f32 %v1941_v40, %v1942_v11 }
 0x14d   : > { %v1414_v20 = vpop.f32.mrf.mxu1 }
 0x14e   : > { %3081 = vmatmul.msk.f32.gmra.mxu3 %vm405_vm0, %v1053_v15  ;;  %v1372_v22 = vpop.f32.mrf.mxu0  ;;  %v1415_v26 = vadd.f32 %v3749_v1, %v1414_v20  ;;  %v1629_v34 = vrot.slane %v1628_v28, 4  ;;  %v1949_v46 = vrot.slane %v1948_v14, 4 }
 0x14f   : > { %3070 = vmatmul.msk.f32.gmra.mxu2 %vm405_vm0, %v935_v52  ;;  %v1373_v6 = vadd.f32 %v3749_v1, %v1372_v22 }
 0x150   : > { %v3787_v32 = vmax.f32 %v1415_v26, 0.0  ;;  %v1630_v45 = vadd.f32 %v1629_v34, %v1628_v28  ;;  %v1950_v62 = vmax.f32 %v1948_v14, %v1949_v46 }
 0x151   : > { %v3789_v36 = vmax.f32 %v1373_v6, 0.0 }
 0x152   : > { %4649 = vst [vmem:[#allocation10_spill] sm:$0xff] %v3787_v32  ;;  %v1698_v41 = vsel %vm1616_vm1, %v3787_v32, 0.0  ;;  %v2018_v42 = vsel %vm1616_vm1, %v3787_v32, -inf  ;;  %v1631_v60 = vrot.slane %v1630_v45, 2  ;;  %v1951_v20 = vrot.slane %v1950_v62, 2 }
 0x153   : > { %4650 = vst [vmem:[#allocation11_spill] sm:$0xff] %v3789_v36  ;;  %v1635_v48 = vsel %vm1616_vm1, %v3789_v36, 0.0  ;;  %v1955_v49 = vsel %vm1616_vm1, %v3789_v36, -inf }
 0x154   : > { %v1632_v19 = vadd.f32 %v1631_v60, %v1630_v45  ;;  %v1952_v29 = vmax.f32 %v1950_v62, %v1951_v20  ;;  %v3840_v45 = vpop.f32.mrf.mxu2 }
 0x155   : > { %v1417_v35 = vpop.f32.mrf.mxu1 }
 0x156   : > { %v1418_v37 = vadd.f32 %v3749_v1, %v1417_v35  ;;  %3082 = vmatmul.msk.f32.gmra.mxu3 %vm405_vm0, %v3712_v53  ;;  %v1375_v38 = vpop.f32.mrf.mxu0  ;;  %v1633_v28 = vrot.slane %v1632_v19, 1  ;;  %v1625_v35 = vadd.f32 %v1624_v24, %v1623_v9 }
 0x157   : > { %v1376_v39 = vadd.f32 %v3749_v1, %v1375_v38  ;;  %3071 = vmatmul.msk.f32.gmra.mxu2 %vm405_vm0, %v3722_v56 }
 0x158   : > { %v3801_v43 = vmax.f32 %v1418_v37, 0.0  ;;  %v1944_v37 = vrot.slane %v1943_v25, 1  ;;  %v1634_v46 = vadd.f32 %v1633_v28, %v1632_v19 }
 0x159   : > { %v3803_v47 = vmax.f32 %v1376_v39, 0.0 }
 0x15a   : > { %4651 = vst [vmem:[#allocation12_spill] sm:$0xff] %v3801_v43  ;;  %v1699_v50 = vsel %vm1616_vm1, %v3801_v43, 0.0  ;;  %v2019_v51 = vsel %vm1616_vm1, %v3801_v43, -inf  ;;  %v1906_v11 = vmul.f32 0.0625, %v1634_v46 }
 0x15b   : > { %4652 = vst [vmem:[#allocation13_spill] sm:$0xff] %v3803_v47  ;;  %v1700_v52 = vadd.f32 %v1699_v50, %v1698_v41  ;;  %v2020_v53 = vmax.f32 %v2018_v42, %v2019_v51  ;;  %v1636_v54 = vsel %vm1616_vm1, %v3803_v47, 0.0  ;;  %v1956_v56 = vsel %vm1616_vm1, %v3803_v47, -inf }
 0x15c   : > { %v1637_v57 = vadd.f32 %v1636_v54, %v1635_v48  ;;  %v1957_v58 = vmax.f32 %v1955_v49, %v1956_v56  ;;  %v1953_v48 = vrot.slane %v1952_v29, 1 }
 0x15d   : > { %v1701_v63 = vrot.slane %v1700_v52, 4  ;;  %v2021_v0 = vrot.slane %v2020_v53, 4  ;;  %v1420_v2 = vpop.f32.mrf.mxu1 }
 0x15e   : > { %v1638_v3 = vrot.slane %v1637_v57, 4  ;;  %3083 = vmatmul.msk.f32.gmra.mxu3 %vm405_vm0, %v3719_v55  ;;  %v1378_v5 = vpop.f32.mrf.mxu0  ;;  %v1958_v16 = vrot.slane %v1957_v58, 4  ;;  %v1421_v18 = vadd.f32 %v3749_v1, %v1420_v2 }
 0x15f   : > { %v1702_v12 = vadd.f32 %v1701_v63, %v1700_v52  ;;  %v2022_v21 = vmax.f32 %v2020_v53, %v2021_v0  ;;  %v1379_v23 = vadd.f32 %v3749_v1, %v1378_v5  ;;  %v1905_v0 = vmul.f32 0.0625, %v1625_v35 }
 0x160   : > { %v1639_v15 = vadd.f32 %v1638_v3, %v1637_v57  ;;  %v1959_v55 = vmax.f32 %v1957_v58, %v1958_v16  ;;  %v3826_v27 = vmax.f32 %v1421_v18, 0.0 }
 0x161   : > { %v1703_v22 = vrot.slane %v1702_v12, 2  ;;  %v2023_v6 = vrot.slane %v2022_v21, 2  ;;  %v3828_v33 = vmax.f32 %v1379_v23, 0.0  ;;  %v1954_v23 = vmax.f32 %v1952_v29, %v1953_v48 }
 0x162   : > { %v1640_v26 = vrot.slane %v1639_v15, 2  ;;  %4653 = vst [vmem:[#allocation14_spill] sm:$0xff] %v3826_v27  ;;  %v1960_v40 = vrot.slane %v1959_v55, 2  ;;  %v1707_v41 = vsel %vm1616_vm1, %v3826_v27, 0.0  ;;  %v2027_v42 = vsel %vm1616_vm1, %v3826_v27, -inf }
 0x163   : > { %v1704_v31 = vadd.f32 %v1703_v22, %v1702_v12  ;;  %4654 = vst [vmem:[#allocation15_spill] sm:$0xff] %v3828_v33  ;;  %v1644_v51 = vsel %vm1616_vm1, %v3828_v33, 0.0  ;;  %v1964_v60 = vsel %vm1616_vm1, %v3828_v33, -inf }
 0x164   : > { %v1641_v38 = vadd.f32 %v1640_v26, %v1639_v15  ;;  %v1961_v59 = vmax.f32 %v1959_v55, %v1960_v40 }
 0x165   : > { %v1423_v30 = vpop.f32.mrf.mxu1  ;;  %v1705_v50 = vrot.slane %v1704_v31, 1 }
 0x166   : > { %v1424_v34 = vadd.f32 %v3749_v1, %v1423_v30  ;;  %3084 = vmatmul.msk.f32.gmra.mxu3 %vm405_vm0, %v3739_v61  ;;  %v1381_v14 = vpop.f32.mrf.mxu0  ;;  %v2024_v61 = vmax.f32 %v2022_v21, %v2023_v6  ;;  %v1642_v54 = vrot.slane %v1641_v38, 1  ;;  %v1962_v24 = vrot.slane %v1961_v59, 1 }
 0x167   : > { %v1382_v39 = vadd.f32 %v3749_v1, %v1381_v14  ;;  %v1706_v12 = vadd.f32 %v1705_v50, %v1704_v31  ;;  %v2226_v14 = vadd.f32 %v1954_v23, %v1906_v11 }
 0x168   : > { %v3838_v44 = vmax.f32 %v1424_v34, 0.0  ;;  %v2025_v15 = vrot.slane %v2024_v61, 1  ;;  %v1643_v19 = vadd.f32 %v1642_v54, %v1641_v38  ;;  %v1945_v34 = vmax.f32 %v1943_v25, %v1944_v37  ;;  %v3865_v25 = vpop.f32.mrf.mxu3 }
 0x169   : > { %v3842_v49 = vmax.f32 %v1382_v39, 0.0  ;;  %v1914_v40 = vmul.f32 0.0625, %v1706_v12 }
 0x16a   : > { %4655 = vst [vmem:[#allocation16_spill] sm:$0xff] %v3838_v44  ;;  %v1708_v52 = vsel %vm1616_vm1, %v3838_v44, 0.0  ;;  %v2028_v53 = vsel %vm1616_vm1, %v3838_v44, -inf  ;;  %v2026_v35 = vmax.f32 %v2024_v61, %v2025_v15  ;;  %v1907_v38 = vmul.f32 0.0625, %v1643_v19 }
 0x16b   : > { %4656 = vst [vmem:[#allocation17_spill] sm:$0xff] %v3842_v49  ;;  %v1709_v56 = vadd.f32 %v1708_v52, %v1707_v41  ;;  %v2029_v57 = vmax.f32 %v2027_v42, %v2028_v53  ;;  %v1645_v58 = vsel %vm1616_vm1, %v3842_v49, 0.0  ;;  %v1965_v63 = vsel %vm1616_vm1, %v3842_v49, -inf }
 0x16c   : > { %v1646_v62 = vadd.f32 %v1645_v58, %v1644_v51  ;;  %v1966_v5 = vmax.f32 %v1964_v60, %v1965_v63  ;;  %v2225_v46 = vadd.f32 %v1945_v34, %v1905_v0  ;;  %v1963_v51 = vmax.f32 %v1961_v59, %v1962_v24 }
 0x16d   : > { %v1710_v2 = vrot.slane %v1709_v56, 4  ;;  %v2030_v3 = vrot.slane %v2029_v57, 4  ;;  %v1426_v9 = vpop.f32.mrf.mxu1  ;;  %v3873_v60 = vadd.f32 %v2026_v35, %v1914_v40 }
 0x16e   : > { %v1647_v16 = vrot.slane %v1646_v62, 4  ;;  %3085 = vmatmul.msk.f32.gmra.mxu3 %vm405_vm0, %v3752_v4  ;;  %v1384_v18 = vpop.f32.mrf.mxu0  ;;  %v1967_v22 = vrot.slane %v1966_v5, 4  ;;  %v1427_v55 = vadd.f32 %v3749_v1, %v1426_v9  ;;  %v3868_v37 = vsel %vm2292_vm2, %v2226_v14, %v2225_v46 }
 0x16f   : > { %v1711_v20 = vadd.f32 %v1710_v2, %v1709_v56  ;;  %v2031_v21 = vmax.f32 %v2029_v57, %v2030_v3  ;;  %v1385_v31 = vadd.f32 %v3749_v1, %v1384_v18  ;;  %v2227_v59 = vadd.f32 %v1963_v51, %v1907_v38 }
 0x170   : > { %v1648_v26 = vadd.f32 %v1647_v16, %v1646_v62  ;;  %v1968_v30 = vmax.f32 %v1966_v5, %v1967_v22  ;;  %v3860_v50 = vmax.f32 %v1427_v55, 0.0 }
 0x171   : > { %v1712_v28 = vrot.slane %v1711_v20, 2  ;;  %v2032_v6 = vrot.slane %v2031_v21, 2  ;;  %v3862_v52 = vmax.f32 %v1385_v31, 0.0 }
 0x172   : > { %v1649_v39 = vrot.slane %v1648_v26, 2  ;;  %v1456_v4 = vpop.f32.mrf.mxu2  ;;  %v1969_v48 = vrot.slane %v1968_v30, 2  ;;  %4657 = vst [vmem:[#allocation18_spill] sm:$0xff] %v3860_v50  ;;  %v1716_v2 = vsel %vm1616_vm1, %v3860_v50, 0.0  ;;  %v2036_v3 = vsel %vm1616_vm1, %v3860_v50, -inf }
 0x173   : > { %v1713_v41 = vadd.f32 %v1712_v28, %v1711_v20  ;;  %v2033_v42 = vmax.f32 %v2031_v21, %v2032_v6  ;;  %4658 = vst [vmem:[#allocation19_spill] sm:$0xff] %v3862_v52  ;;  %v1457_v53 = vadd.f32 %v3749_v1, %v1456_v4  ;;  %v1973_v9 = vsel %vm1616_vm1, %v3862_v52, -inf }
 0x174   : > { %v1650_v29 = vadd.f32 %v1649_v39, %v1648_v26  ;;  %v1970_v0 = vmax.f32 %v1968_v30, %v1969_v48 }
 0x175   : > { %v1429_v54 = vpop.f32.mrf.mxu1  ;;  %v1714_v61 = vrot.slane %v1713_v41, 1  ;;  %v2034_v56 = vrot.slane %v2033_v42, 1  ;;  %v3886_v11 = vmax.f32 %v1457_v53, 0.0  ;;  %v3910_v53 = vpop.f32.mrf.mxu3 }
 0x176   : > { %v1430_v57 = vadd.f32 %v3749_v1, %v1429_v54  ;;  %3086 = vmatmul.msk.f32.gmra.mxu3 %vm405_vm0, %v3822_v8  ;;  %v1387_v58 = vpop.f32.mrf.mxu0  ;;  %v1651_v62 = vrot.slane %v1650_v29, 1  ;;  %v1653_v8 = vsel %vm1616_vm1, %v3862_v52, 0.0  ;;  %v1971_v26 = vrot.slane %v1970_v0, 1 }
 0x177   : > { %v1388_v63 = vadd.f32 %v3749_v1, %v1387_v58  ;;  %4660 = vst [vmem:[#allocation21_spill] sm:$0xff] %v3886_v11  ;;  %v1715_v15 = vadd.f32 %v1714_v61, %v1713_v41  ;;  %v2035_v16 = vmax.f32 %v2033_v42, %v2034_v56  ;;  %v1761_v30 = vsel %vm1616_vm1, %v3886_v11, 0.0  ;;  %v335_v42 = vld [vmem:[%s4587_s4 + $0x8] sm:$0xff] }
 0x178   : > { %v3880_v5 = vmax.f32 %v1430_v57, 0.0  ;;  %v1652_v21 = vadd.f32 %v1651_v62, %v1650_v29  ;;  %v2081_v4 = vsel %vm1616_vm1, %v3886_v11, -inf  ;;  %2349 = vmatpush.msrb.mxu1 %v335_v42 }
 0x179   : > { %v3888_v12 = vmax.f32 %v1388_v63, 0.0  ;;  %v1915_v39 = vmul.f32 0.0625, %v1715_v15 }
 0x17a   : > { %4659 = vst [vmem:[#allocation20_spill] sm:$0xff] %v3880_v5  ;;  %v1717_v18 = vsel %vm1616_vm1, %v3880_v5, 0.0  ;;  %v2037_v19 = vsel %vm1616_vm1, %v3880_v5, -inf  ;;  %v1459_v20 = vpop.f32.mrf.mxu2  ;;  %v1908_v46 = vmul.f32 0.0625, %v1652_v21 }
 0x17b   : > { %4661 = vst [vmem:[#allocation22_spill] sm:$0xff] %v3888_v12  ;;  %v1718_v22 = vadd.f32 %v1717_v18, %v1716_v2  ;;  %v2038_v23 = vmax.f32 %v2036_v3, %v2037_v19  ;;  %v1654_v24 = vsel %vm1616_vm1, %v3888_v12, 0.0  ;;  %v1974_v28 = vsel %vm1616_vm1, %v3888_v12, -inf }
 0x17c   : > { %v1655_v55 = vadd.f32 %v1654_v24, %v1653_v8  ;;  %v1460_v6 = vadd.f32 %v3749_v1, %v1459_v20  ;;  %v1975_v14 = vmax.f32 %v1973_v9, %v1974_v28  ;;  %v1972_v2 = vmax.f32 %v1970_v0, %v1971_v26 }
 0x17d   : > { %v1719_v31 = vrot.slane %v1718_v22, 4  ;;  %v2039_v34 = vrot.slane %v2038_v23, 4  ;;  %v1432_v35 = vpop.f32.mrf.mxu1 }
 0x17e   : > { %v1656_v40 = vrot.slane %v1655_v55, 4  ;;  %v3903_v38 = vmax.f32 %v1460_v6, 0.0  ;;  %3087 = vmatmul.msk.f32.gmra.mxu3 %vm405_vm0, %v3840_v45  ;;  %v1390_v41 = vpop.f32.mrf.mxu0  ;;  %v1976_v51 = vrot.slane %v1975_v14, 4  ;;  %v1433_v45 = vadd.f32 %v3749_v1, %v1432_v35 }
 0x17f   : > { %v1720_v29 = vadd.f32 %v1719_v31, %v1718_v22  ;;  %v2040_v48 = vmax.f32 %v2038_v23, %v2039_v34  ;;  %v1391_v9 = vadd.f32 %v3749_v1, %v1390_v41  ;;  %v2295_v22 = vsel %vm2294_vm3, %v2227_v59, %v3868_v37 }
 0x180   : > { %4662 = vst [vmem:[#allocation23_spill] sm:$0xff] %v3903_v38  ;;  %v1657_v54 = vadd.f32 %v1656_v40, %v1655_v55  ;;  %v1762_v61 = vsel %vm1616_vm1, %v3903_v38, 0.0  ;;  %v2082_v56 = vsel %vm1616_vm1, %v3903_v38, -inf  ;;  %v1977_v62 = vmax.f32 %v1975_v14, %v1976_v51 }
 0x181   : > { %v1721_v57 = vrot.slane %v1720_v29, 2  ;;  %v2041_v58 = vrot.slane %v2040_v48, 2  ;;  %v1763_v63 = vadd.f32 %v1762_v61, %v1761_v30  ;;  %v2083_v8 = vmax.f32 %v2081_v4, %v2082_v56 }
 0x182   : > { %v1658_v3 = vrot.slane %v1657_v54, 2  ;;  %v1462_v15 = vpop.f32.mrf.mxu2  ;;  %v1978_v20 = vrot.slane %v1977_v62, 2  ;;  %v2228_v23 = vadd.f32 %v1972_v2, %v1908_v46  ;;  %v3920_v30 = vmax.f32 %v1433_v45, 0.0 }
 0x183   : > { %v1722_v18 = vadd.f32 %v1721_v57, %v1720_v29  ;;  %v2042_v19 = vmax.f32 %v2040_v48, %v2041_v58  ;;  %v1764_v21 = vrot.slane %v1763_v63, 4  ;;  %v2084_v55 = vrot.slane %v2083_v8, 4 }
 0x184   : > { %v1659_v24 = vadd.f32 %v1658_v3, %v1657_v54  ;;  %v1979_v6 = vmax.f32 %v1977_v62, %v1978_v20  ;;  %4663 = vst [vmem:[#allocation24_spill] sm:$0xff] %v3920_v30  ;;  %v3922_v14 = vmax.f32 %v1391_v9, 0.0  ;;  %v3926_v4 = vadd.f32 %v2035_v16, %v1915_v39 }
 0x185   : > { %v1723_v28 = vrot.slane %v1722_v18, 1  ;;  %v1765_v31 = vadd.f32 %v1764_v21, %v1763_v63  ;;  %v1435_v0 = vpop.f32.mrf.mxu1  ;;  %v2085_v34 = vmax.f32 %v2083_v8, %v2084_v55  ;;  %v2043_v37 = vrot.slane %v2042_v19, 1 }
 0x186   : > { %v1660_v26 = vrot.slane %v1659_v24, 1  ;;  %4664 = vst [vmem:[#allocation25_spill] sm:$0xff] %v3922_v14  ;;  %3088 = vmatmul.msk.f32.gmra.mxu3 %vm405_vm0, %v3865_v25  ;;  %v1393_v35 = vpop.f32.mrf.mxu0  ;;  %v1463_v40 = vadd.f32 %v3749_v1, %v1462_v15  ;;  %v1980_v46 = vrot.slane %v1979_v6, 1  ;;  %v1436_v29 = vadd.f32 %v3749_v1, %v1435_v0 }
 0x187   : > { %v1766_v59 = vrot.slane %v1765_v31, 2  ;;  %v1724_v41 = vadd.f32 %v1723_v28, %v1722_v18  ;;  %v1725_v51 = vsel %vm1616_vm1, %v3920_v30, 0.0  ;;  %v1394_v54 = vadd.f32 %v3749_v1, %v1393_v35 }
 0x188   : > { %v1661_v42 = vadd.f32 %v1660_v26, %v1659_v24  ;;  %v3934_v61 = vsel %vm2296_vm4, %v2228_v23, %v2295_v22  ;;  %v2086_v16 = vrot.slane %v2085_v34, 2  ;;  %v2045_v39 = vsel %vm1616_vm1, %v3920_v30, -inf }
 0x189   : > { %v1767_v48 = vadd.f32 %v1766_v59, %v1765_v31  ;;  %v1498_v25 = vpop.f32.mrf.mxu3  ;;  %v1662_v56 = vsel %vm1616_vm1, %v3922_v14, 0.0  ;;  %v1982_v45 = vsel %vm1616_vm1, %v3922_v14, -inf  ;;  %v2044_v58 = vmax.f32 %v2042_v19, %v2043_v37 }
 0x18a   : > { %v1465_v57 = vpop.f32.mrf.mxu2  ;;  %v3942_v62 = vmax.f32 %v1463_v40, 0.0  ;;  %v3944_v63 = vmax.f32 %v1436_v29, 0.0  ;;  %v3946_v2 = vmax.f32 %v1394_v54, 0.0  ;;  %v1916_v3 = vmul.f32 0.0625, %v1724_v41 }
 0x18b   : > { %v1909_v8 = vmul.f32 0.0625, %v1661_v42  ;;  %v1981_v9 = vmax.f32 %v1979_v6, %v1980_v46  ;;  %v1466_v15 = vadd.f32 %v3749_v1, %v1465_v57  ;;  %v1768_v18 = vrot.slane %v1767_v48, 1 }
 0x18c   : > { %4665 = vst [vmem:[#allocation26_spill] sm:$0xff] %v3942_v62  ;;  %v1726_v20 = vsel %vm1616_vm1, %v3944_v63, 0.0  ;;  %v2046_v21 = vsel %vm1616_vm1, %v3944_v63, -inf  ;;  %v1663_v19 = vsel %vm1616_vm1, %v3946_v2, 0.0  ;;  %v2087_v22 = vmax.f32 %v2085_v34, %v2086_v16 }
 0x18d   : > { %4666 = vst [vmem:[#allocation27_spill] sm:$0xff] %v3944_v63  ;;  %v1727_v23 = vadd.f32 %v1726_v20, %v1725_v51  ;;  %v2047_v24 = vmax.f32 %v2045_v39, %v2046_v21  ;;  %v1664_v55 = vadd.f32 %v1663_v19, %v1662_v56  ;;  %v1770_v28 = vsel %vm1616_vm1, %v3942_v62, 0.0  ;;  %v1438_v26 = vpop.f32.mrf.mxu1 }
 0x18e   : > { %4667 = vst [vmem:[#allocation28_spill] sm:$0xff] %v3946_v2  ;;  %3089 = vmatmul.msk.f32.gmra.mxu3 %vm405_vm0, %v3910_v53  ;;  %v2090_v6 = vsel %vm1616_vm1, %v3942_v62, -inf  ;;  %v1983_v31 = vsel %vm1616_vm1, %v3946_v2, -inf  ;;  %v3963_v0 = vmax.f32 %v1466_v15, 0.0  ;;  %v3965_v40 = vadd.f32 %v2044_v58, %v1916_v3  ;;  %v1396_v39 = vpop.f32.mrf.mxu0 }
 0x18f   : > { %v1728_v35 = vrot.slane %v1727_v23, 4  ;;  %v2048_v34 = vrot.slane %v2047_v24, 4  ;;  %v1665_v37 = vrot.slane %v1664_v55, 4  ;;  %v1984_v59 = vmax.f32 %v1982_v45, %v1983_v31 }
 0x190   : > { %4668 = vst [vmem:[#allocation29_spill] sm:$0xff] %v3963_v0  ;;  %v1769_v41 = vadd.f32 %v1768_v18, %v1767_v48  ;;  %v1499_v53 = vadd.f32 %v3749_v1, %v1498_v25  ;;  %v1771_v42 = vsel %vm1616_vm1, %v3963_v0, 0.0  ;;  %v2088_v56 = vrot.slane %v2087_v22, 1 }
 0x191   : > { %v1501_v46 = vpop.f32.mrf.mxu3  ;;  %v1729_v29 = vadd.f32 %v1728_v35, %v1727_v23  ;;  %v2049_v51 = vmax.f32 %v2047_v24, %v2048_v34  ;;  %v1666_v54 = vadd.f32 %v1665_v37, %v1664_v55  ;;  %v1985_v16 = vrot.slane %v1984_v59, 4 }
 0x192   : > { %v1772_v57 = vadd.f32 %v1771_v42, %v1770_v28  ;;  %v2091_v15 = vsel %vm1616_vm1, %v3963_v0, -inf  ;;  %v1439_v45 = vadd.f32 %v3749_v1, %v1438_v26  ;;  %v1921_v18 = vmul.f32 0.0625, %v1769_v41  ;;  %v1468_v28 = vpop.f32.mrf.mxu2 }
 0x193   : > { %v1730_v58 = vrot.slane %v1729_v29, 2  ;;  %v2050_v48 = vrot.slane %v2049_v51, 2  ;;  %v1667_v3 = vrot.slane %v1666_v54, 2  ;;  %v1986_v25 = vmax.f32 %v1984_v59, %v1985_v16 }
 0x194   : > { %v1773_v20 = vrot.slane %v1772_v57, 4  ;;  %v2092_v21 = vmax.f32 %v2090_v6, %v2091_v15  ;;  %v1397_v19 = vadd.f32 %v3749_v1, %v1396_v39  ;;  %v3974_v31 = vmax.f32 %v1499_v53, 0.0 }
 0x195   : > { %v1731_v23 = vadd.f32 %v1730_v58, %v1729_v29  ;;  %v1668_v24 = vadd.f32 %v1667_v3, %v1666_v54  ;;  %v1987_v55 = vrot.slane %v1986_v25, 2  ;;  %v3976_v35 = vadd.f32 %v1981_v9, %v1909_v8  ;;  %v1441_v29 = vpop.f32.mrf.mxu1 }
 0x196   : > { %4669 = vst [vmem:[#allocation30_spill] sm:$0xff] %v3974_v31  ;;  %v2089_v34 = vmax.f32 %v2087_v22, %v2088_v56  ;;  %v1774_v37 = vadd.f32 %v1773_v20, %v1772_v57  ;;  %v2093_v26 = vrot.slane %v2092_v21, 4  ;;  %v2051_v63 = vmax.f32 %v2049_v51, %v2050_v48 }
 0x197   : > { %v1732_v42 = vrot.slane %v1731_v23, 1  ;;  %v1669_v30 = vrot.slane %v1668_v24, 1  ;;  %v3978_v59 = vmax.f32 %v1439_v45, 0.0  ;;  %v1988_v41 = vmax.f32 %v1986_v25, %v1987_v55 }
 0x198   : > { %v1775_v6 = vrot.slane %v1774_v37, 2  ;;  %v2094_v16 = vmax.f32 %v2092_v21, %v2093_v26  ;;  %v3980_v39 = vmax.f32 %v1397_v19, 0.0  ;;  %v3982_v53 = vadd.f32 %v2089_v34, %v1921_v18 }
 0x199   : > { %4670 = vst [vmem:[#allocation31_spill] sm:$0xff] %v3978_v59  ;;  %v1504_v54 = vpop.f32.mrf.mxu3  ;;  %v1733_v15 = vadd.f32 %v1732_v42, %v1731_v23  ;;  %v1670_v8 = vadd.f32 %v1669_v30, %v1668_v24  ;;  %v1824_v9 = vsel %vm1616_vm1, %v3974_v31, 0.0  ;;  %v2144_v22 = vsel %vm1616_vm1, %v3974_v31, -inf  ;;  %v1399_v30 = vpop.f32.mrf.mxu0 }
 0x19a   : > { %4671 = vst [vmem:[#allocation32_spill] sm:$0xff] %v3980_v39  ;;  %v1776_v51 = vadd.f32 %v1775_v6, %v1774_v37  ;;  %v2095_v56 = vrot.slane %v2094_v16, 2  ;;  %v1502_v57 = vadd.f32 %v3749_v1, %v1501_v46  ;;  %v2052_v45 = vrot.slane %v2051_v63, 1 }
 0x19b   : > { %v1734_v58 = vsel %vm1616_vm1, %v3978_v59, 0.0  ;;  %v2054_v48 = vsel %vm1616_vm1, %v3978_v59, -inf  ;;  %v1442_v3 = vadd.f32 %v3749_v1, %v1441_v29  ;;  %v1989_v25 = vrot.slane %v1988_v41, 1 }
 0x19c   : > { %v1671_v18 = vsel %vm1616_vm1, %v3980_v39, 0.0  ;;  %v3996_v20 = vmax.f32 %v1502_v57, 0.0  ;;  %v1469_v21 = vadd.f32 %v3749_v1, %v1468_v28  ;;  %v1917_v19 = vmul.f32 0.0625, %v1733_v15  ;;  %v1471_v15 = vpop.f32.mrf.mxu2 }
 0x19d   : > { %v1910_v46 = vmul.f32 0.0625, %v1670_v8  ;;  %v1777_v23 = vrot.slane %v1776_v51, 1  ;;  %v3999_v24 = vmax.f32 %v1442_v3, 0.0  ;;  %v2096_v55 = vmax.f32 %v2094_v16, %v2095_v56 }
 0x19e   : > { %4672 = vst [vmem:[#allocation33_spill] sm:$0xff] %v3996_v20  ;;  %v1825_v34 = vsel %vm1616_vm1, %v3996_v20, 0.0  ;;  %v2145_v37 = vsel %vm1616_vm1, %v3996_v20, -inf  ;;  %v1400_v26 = vadd.f32 %v3749_v1, %v1399_v30  ;;  %v2053_v42 = vmax.f32 %v2051_v63, %v2052_v45 }
 0x19f   : > { %4673 = vst [vmem:[#allocation34_spill] sm:$0xff] %v3999_v24  ;;  %v1991_v6 = vsel %vm1616_vm1, %v3980_v39, -inf  ;;  %v1826_v29 = vadd.f32 %v1825_v34, %v1824_v9  ;;  %v2146_v28 = vmax.f32 %v2144_v22, %v2145_v37  ;;  %v1990_v8 = vmax.f32 %v1988_v41, %v1989_v25 }
 0x1a0   : > { %v4008_v57 = vmax.f32 %v1469_v21, 0.0  ;;  %v1735_v16 = vsel %vm1616_vm1, %v3999_v24, 0.0  ;;  %v2055_v56 = vsel %vm1616_vm1, %v3999_v24, -inf  ;;  %v4014_v3 = vadd.f32 %v2053_v42, %v1917_v19 }
 0x1a1   : > { %v1778_v20 = vadd.f32 %v1777_v23, %v1776_v51  ;;  %v1736_v30 = vadd.f32 %v1735_v16, %v1734_v58  ;;  %v2056_v63 = vmax.f32 %v2054_v48, %v2055_v56  ;;  %v4016_v45 = vpop.f32.mrf.mxu3  ;;  %v4018_v31 = vadd.f32 %v1990_v8, %v1910_v46  ;;  %v1444_v46 = vpop.f32.mrf.mxu1  ;;  %v334_v16 = vld [vmem:[%s4587_s4] sm:$0xff] }
 0x1a2   : > { %4674 = vst [vmem:[#allocation35_spill] sm:$0xff] %v4008_v57  ;;  %v2097_v9 = vrot.slane %v2096_v55, 1  ;;  %v4020_v22 = vmax.f32 %v1400_v26, 0.0  ;;  %v1472_v41 = vadd.f32 %v3749_v1, %v1471_v15  ;;  %v1827_v25 = vrot.slane %v1826_v29, 4  ;;  %v1402_v8 = vpop.f32.mrf.mxu0  ;;  %2350 = vmatpush.msrb.mxu1 %v334_v16 }
 0x1a3   : > { %v2147_v21 = vrot.slane %v2146_v28, 4  ;;  %v1737_v34 = vrot.slane %v1736_v30, 4  ;;  %v2057_v37 = vrot.slane %v2056_v63, 4  ;;  %v1779_v19 = vsel %vm1616_vm1, %v4008_v57, 0.0 }
 0x1a4   : > { %4675 = vst [vmem:[#allocation36_spill] sm:$0xff] %v4020_v22  ;;  %v1672_v51 = vsel %vm1616_vm1, %v4020_v22, 0.0  ;;  %v1992_v58 = vsel %vm1616_vm1, %v4020_v22, -inf  ;;  %v4029_v48 = vmax.f32 %v1472_v41, 0.0  ;;  %v1922_v23 = vmul.f32 0.0625, %v1778_v20 }
 0x1a5   : > { %v2099_v26 = vsel %vm1616_vm1, %v4008_v57, -inf  ;;  %v1738_v42 = vadd.f32 %v1737_v34, %v1736_v30  ;;  %v2058_v15 = vmax.f32 %v2056_v63, %v2057_v37  ;;  %v2098_v56 = vmax.f32 %v2096_v55, %v2097_v9 }
 0x1a6   : > { %4676 = vst [vmem:[#allocation37_spill] sm:$0xff] %v4029_v48  ;;  %v1673_v24 = vadd.f32 %v1672_v51, %v1671_v18  ;;  %v1993_v59 = vmax.f32 %v1991_v6, %v1992_v58  ;;  %v1505_v39 = vadd.f32 %v3749_v1, %v1504_v54  ;;  %v1828_v41 = vadd.f32 %v1827_v25, %v1826_v29  ;;  %v1474_v58 = vpop.f32.mrf.mxu2 }
 0x1a7   : > { %v2148_v22 = vmax.f32 %v2146_v28, %v2147_v21  ;;  %v1739_v2 = vrot.slane %v1738_v42, 2  ;;  %v2059_v20 = vrot.slane %v2058_v15, 2  ;;  %v1780_v30 = vsel %vm1616_vm1, %v4029_v48, 0.0 }
 0x1a8   : > { %v1674_v5 = vrot.slane %v1673_v24, 4  ;;  %v1994_v14 = vrot.slane %v1993_v59, 4  ;;  %v2100_v63 = vsel %vm1616_vm1, %v4029_v48, -inf  ;;  %v1781_v55 = vadd.f32 %v1780_v30, %v1779_v19 }
 0x1a9   : > { %v1740_v34 = vadd.f32 %v1739_v2, %v1738_v42  ;;  %v2060_v37 = vmax.f32 %v2058_v15, %v2059_v20  ;;  %v2101_v18 = vmax.f32 %v2099_v26, %v2100_v63  ;;  %v4041_v54 = vmax.f32 %v1505_v39, 0.0  ;;  %v4044_v16 = vpop.f32.mrf.mxu3  ;;  %v1447_v42 = vpop.f32.mrf.mxu1 }
 0x1aa   : > { %v1675_v6 = vadd.f32 %v1674_v5, %v1673_v24  ;;  %v1995_v9 = vmax.f32 %v1993_v59, %v1994_v14  ;;  %v1445_v29 = vadd.f32 %v3749_v1, %v1444_v46  ;;  %v1829_v28 = vrot.slane %v1828_v41, 2 }
 0x1ab   : > { %4677 = vst [vmem:[#allocation38_spill] sm:$0xff] %v4041_v54  ;;  %v1741_v25 = vrot.slane %v1740_v34, 1  ;;  %v1782_v21 = vrot.slane %v1781_v55, 4  ;;  %v2102_v51 = vrot.slane %v2101_v18, 4  ;;  %v2149_v57 = vrot.slane %v2148_v22, 2 }
 0x1ac   : > { %v1676_v50 = vrot.slane %v1675_v6, 2  ;;  %v1996_v48 = vrot.slane %v1995_v9, 2  ;;  %v1403_v2 = vadd.f32 %v3749_v1, %v1402_v8  ;;  %v2061_v19 = vrot.slane %v2060_v37, 1  ;;  %v1405_v8 = vpop.f32.mrf.mxu0 }
 0x1ad   : > { %v1783_v26 = vadd.f32 %v1782_v21, %v1781_v55  ;;  %v2103_v5 = vmax.f32 %v2101_v18, %v2102_v51  ;;  %v4047_v14 = vmax.f32 %v1445_v29, 0.0  ;;  %v4049_v59 = vadd.f32 %v2098_v56, %v1922_v23 }
 0x1ae   : > { %v1677_v39 = vadd.f32 %v1676_v50, %v1675_v6  ;;  %v1997_v24 = vmax.f32 %v1995_v9, %v1996_v48  ;;  %v1833_v46 = vsel %vm1616_vm1, %v4041_v54, 0.0  ;;  %v1742_v15 = vadd.f32 %v1741_v25, %v1740_v34 }
 0x1af   : > { %4678 = vst [vmem:[#allocation39_spill] sm:$0xff] %v4047_v14  ;;  %v2153_v20 = vsel %vm1616_vm1, %v4041_v54, -inf  ;;  %v1784_v30 = vrot.slane %v1783_v26, 2  ;;  %v2104_v63 = vrot.slane %v2103_v5, 2  ;;  %v4055_v12 = vadd.f32 %v1829_v28, %v1828_v41 }
 0x1b0   : > { %v4057_v55 = vmax.f32 %v2148_v22, %v2149_v57  ;;  %v4059_v18 = vmax.f32 %v1403_v2, 0.0  ;;  %v1508_v50 = vadd.f32 %v3749_v1, %v4016_v45  ;;  %v4063_v48 = vmax.f32 %v2060_v37, %v2061_v19 }
 0x1b1   : > { %v1785_v23 = vadd.f32 %v1784_v30, %v1783_v26  ;;  %v1743_v56 = vsel %vm1616_vm1, %v4047_v14, 0.0  ;;  %v1448_v34 = vadd.f32 %v3749_v1, %v1447_v42  ;;  %v1678_v6 = vrot.slane %v1677_v39, 1  ;;  %v1477_v42 = vpop.f32.mrf.mxu2  ;;  %v1450_v44 = vpop.f32.mrf.mxu1 }
 0x1b2   : > { %4679 = vst [vmem:[#allocation40_spill] sm:$0xff] %v4059_v18  ;;  %v1998_v9 = vrot.slane %v1997_v24, 1  ;;  %v4068_v29 = vmax.f32 %v1508_v50, 0.0  ;;  %v1406_v57 = vadd.f32 %v3749_v1, %v1405_v8  ;;  %v4071_v22 = vmul.f32 0.0625, %v1742_v15  ;;  %v4086_v15 = vpop.f32.mrf.mxu3 }
 0x1b3   : > { %v2105_v41 = vmax.f32 %v2103_v5, %v2104_v63  ;;  %v2063_v45 = vsel %vm1616_vm1, %v4047_v14, -inf  ;;  %v4075_v37 = vmax.f32 %v1448_v34, 0.0  ;;  %v1475_v21 = vadd.f32 %v3749_v1, %v1474_v58 }
 0x1b4   : > { %4680 = vst [vmem:[#allocation41_spill] sm:$0xff] %v4068_v29  ;;  %v1834_v28 = vsel %vm1616_vm1, %v4068_v29, 0.0  ;;  %v2154_v25 = vsel %vm1616_vm1, %v4068_v29, -inf  ;;  %v4082_v51 = vmax.f32 %v1406_v57, 0.0  ;;  %v1786_v2 = vrot.slane %v1785_v23, 1  ;;  %v1408_v52 = vpop.f32.mrf.mxu0 }
 0x1b5   : > { %4681 = vst [vmem:[#allocation42_spill] sm:$0xff] %v4075_v37  ;;  %v1680_v19 = vsel %vm1616_vm1, %v4059_v18, 0.0  ;;  %v1835_v26 = vadd.f32 %v1834_v28, %v1833_v46  ;;  %v2155_v5 = vmax.f32 %v2153_v20, %v2154_v25  ;;  %v1679_v30 = vadd.f32 %v1678_v6, %v1677_v39 }
 0x1b6   : > { %4682 = vst [vmem:[#allocation43_spill] sm:$0xff] %v4082_v51  ;;  %v1999_v63 = vmax.f32 %v1997_v24, %v1998_v9  ;;  %v2000_v8 = vsel %vm1616_vm1, %v4059_v18, -inf  ;;  %v1744_v50 = vsel %vm1616_vm1, %v4075_v37, 0.0  ;;  %v2106_v58 = vrot.slane %v2105_v41, 1 }
 0x1b7   : > { %v1836_v34 = vrot.slane %v1835_v26, 4  ;;  %v2156_v57 = vrot.slane %v2155_v5, 4  ;;  %v1745_v29 = vadd.f32 %v1744_v50, %v1743_v56  ;;  %v4092_v54 = vmax.f32 %v1475_v21, 0.0 }
 0x1b8   : > { %v2064_v46 = vsel %vm1616_vm1, %v4075_v37, -inf  ;;  %v1681_v20 = vsel %vm1616_vm1, %v4082_v51, 0.0  ;;  %v2001_v39 = vsel %vm1616_vm1, %v4082_v51, -inf  ;;  %v1787_v24 = vadd.f32 %v1786_v2, %v1785_v23 }
 0x1b9   : > { %4683 = vst [vmem:[#allocation44_spill] sm:$0xff] %v4092_v54  ;;  %v1837_v6 = vadd.f32 %v1836_v34, %v1835_v26  ;;  %v2157_v9 = vmax.f32 %v2155_v5, %v2156_v57  ;;  %v1746_v28 = vrot.slane %v1745_v29, 4  ;;  %v2065_v25 = vmax.f32 %v2063_v45, %v2064_v46 }
 0x1ba   : > { %v1682_v14 = vadd.f32 %v1681_v20, %v1680_v19  ;;  %v2002_v18 = vmax.f32 %v2000_v8, %v2001_v39  ;;  %v1511_v56 = vadd.f32 %v3749_v1, %v4044_v16  ;;  %v1478_v37 = vadd.f32 %v3749_v1, %v1477_v42  ;;  %v1480_v42 = vpop.f32.mrf.mxu2 }
 0x1bb   : > { %v1838_v21 = vrot.slane %v1837_v6, 2  ;;  %v2158_v50 = vrot.slane %v2157_v9, 2  ;;  %v1747_v0 = vadd.f32 %v1746_v28, %v1745_v29  ;;  %v1911_v62 = vmul.f32 0.0625, %v1679_v30  ;;  %v4109_v30 = vpop.f32.mrf.mxu3 }
 0x1bc   : > { %v2066_v27 = vrot.slane %v2065_v25, 4  ;;  %v1683_v51 = vrot.slane %v1682_v14, 4  ;;  %v2003_v23 = vrot.slane %v2002_v18, 4  ;;  %v2107_v2 = vmax.f32 %v2105_v41, %v2106_v58 }
 0x1bd   : > { %v1839_v26 = vadd.f32 %v1838_v21, %v1837_v6  ;;  %v2159_v5 = vmax.f32 %v2157_v9, %v2158_v50  ;;  %v1748_v45 = vrot.slane %v1747_v0, 2  ;;  %v4103_v57 = vmax.f32 %v1478_v37, 0.0 }
 0x1be   : > { %v2067_v19 = vmax.f32 %v2065_v25, %v2066_v27  ;;  %v1684_v8 = vadd.f32 %v1683_v51, %v1682_v14  ;;  %v2004_v34 = vmax.f32 %v2002_v18, %v2003_v23  ;;  %v1923_v16 = vmul.f32 0.0625, %v1787_v24 }
 0x1bf   : > { %4684 = vst [vmem:[#allocation45_spill] sm:$0xff] %v4103_v57  ;;  %v1840_v46 = vrot.slane %v1839_v26, 1  ;;  %v1788_v1 = vsel %vm1616_vm1, %v4092_v54, 0.0  ;;  %v4107_v29 = vmax.f32 %v1511_v56, 0.0  ;;  %v1749_v20 = vadd.f32 %v1748_v45, %v1747_v0  ;;  %v4120_v0 = vld [vmem:[%s4586_s3] ss:$0 sm:$0xff] }
 0x1c0   : > { %v1685_v41 = vrot.slane %v1684_v8, 2  ;;  %v2005_v58 = vrot.slane %v2004_v34, 2  ;;  %v1789_v27 = vsel %vm1616_vm1, %v4103_v57, 0.0  ;;  %v2160_v14 = vrot.slane %v2159_v5, 1 }
 0x1c1   : > { %4685 = vst [vmem:[#allocation46_spill] sm:$0xff] %v4107_v29  ;;  %v2108_v18 = vsel %vm1616_vm1, %v4092_v54, -inf  ;;  %v2068_v37 = vrot.slane %v2067_v19, 2  ;;  %v1790_v51 = vadd.f32 %v1789_v27, %v1788_v1  ;;  %v2109_v6 = vsel %vm1616_vm1, %v4103_v57, -inf  ;;  %v1453_v27 = vpop.f32.mrf.mxu1 }
 0x1c2   : > { %v1686_v39 = vadd.f32 %v1685_v41, %v1684_v8  ;;  %v2006_v24 = vmax.f32 %v2004_v34, %v2005_v58  ;;  %v1451_v9 = vadd.f32 %v4120_v0, %v1450_v44  ;;  %v4123_v28 = vadd.f32 %v1999_v63, %v1911_v62  ;;  %v1411_v44 = vpop.f32.mrf.mxu0 }
 0x1c3   : > { %v4125_v25 = vadd.f32 %v2107_v2, %v1923_v16  ;;  %v1791_v56 = vrot.slane %v1790_v51, 4  ;;  %v2110_v21 = vmax.f32 %v2108_v18, %v2109_v6  ;;  %v1841_v50 = vadd.f32 %v1840_v46, %v1839_v26 }
 0x1c4   : > { %v1750_v23 = vrot.slane %v1749_v20, 1  ;;  %v1687_v45 = vrot.slane %v1686_v39, 1  ;;  %v1842_v8 = vsel %vm1616_vm1, %v4107_v29, 0.0  ;;  %v4129_v34 = vmax.f32 %v2067_v19, %v2068_v37 }
 0x1c5   : > { %v1792_v1 = vadd.f32 %v1791_v56, %v1790_v51  ;;  %v2111_v41 = vrot.slane %v2110_v21, 4  ;;  %v1409_v58 = vadd.f32 %v4120_v0, %v1408_v52  ;;  %v4132_v62 = vmax.f32 %v2159_v5, %v2160_v14  ;;  %v1483_v56 = vpop.f32.mrf.mxu2 }
 0x1c6   : > { %v2007_v63 = vrot.slane %v2006_v24, 1  ;;  %v2162_v2 = vsel %vm1616_vm1, %v4107_v29, -inf  ;;  %v4136_v26 = vmax.f32 %v1451_v9, 0.0  ;;  %v1688_v16 = vadd.f32 %v1687_v45, %v1686_v39 }
 0x1c7   : > { %v1793_v46 = vrot.slane %v1792_v1, 2  ;;  %v2112_v18 = vmax.f32 %v2110_v21, %v2111_v41  ;;  %v1514_v19 = vadd.f32 %v4120_v0, %v4086_v15  ;;  %v4140_v37 = vmul.f32 0.0625, %v1841_v50  ;;  %v4150_v21 = vpop.f32.mrf.mxu3 }
 0x1c8   : > { %4686 = vst [vmem:[#allocation47_spill] sm:$0xff] %v4136_v26  ;;  %v4142_v51 = vmax.f32 %v1409_v58, 0.0  ;;  %v1454_v52 = vadd.f32 %v4120_v0, %v1453_v27  ;;  %v1412_v5 = vadd.f32 %v4120_v0, %v1411_v44  ;;  %v4146_v14 = vadd.f32 %v1750_v23, %v1749_v20 }
 0x1c9   : > { %v1794_v9 = vadd.f32 %v1793_v46, %v1792_v1  ;;  %v1481_v39 = vadd.f32 %v4120_v0, %v1480_v42  ;;  %v4152_v45 = vmax.f32 %v2006_v24, %v2007_v63  ;;  %v4154_v15 = vmax.f32 %v1514_v19, 0.0 }
 0x1ca   : > { %v4156_v50 = vmax.f32 %v1454_v52, 0.0  ;;  %v4158_v41 = vmax.f32 %v1412_v5, 0.0  ;;  %v4160_v58 = vmul.f32 0.0625, %v1688_v16  ;;  %v2113_v20 = vrot.slane %v2112_v18, 2 }
 0x1cb   : > { %4687 = vst [vmem:[#allocation48_spill] sm:$0xff] %v4154_v15  ;;  %v1752_v23 = vsel %vm1616_vm1, %v4136_v26, 0.0  ;;  %v2072_v42 = vsel %vm1616_vm1, %v4136_v26, -inf  ;;  %v1689_v1 = vsel %vm1616_vm1, %v4142_v51, 0.0  ;;  %v2009_v24 = vsel %vm1616_vm1, %v4142_v51, -inf }
 0x1cc   : > { %4688 = vst [vmem:[#allocation49_spill] sm:$0xff] %v4156_v50  ;;  %v1843_v27 = vsel %vm1616_vm1, %v4154_v15, 0.0  ;;  %v2163_v44 = vsel %vm1616_vm1, %v4154_v15, -inf  ;;  %v1795_v63 = vrot.slane %v1794_v9, 1  ;;  %v4174_v19 = vmax.f32 %v1481_v39, 0.0 }
 0x1cd   : > { %4689 = vst [vmem:[#allocation50_spill] sm:$0xff] %v4158_v41  ;;  %v1844_v16 = vadd.f32 %v1843_v27, %v1842_v8  ;;  %v2164_v46 = vmax.f32 %v2162_v2, %v2163_v44  ;;  %v1753_v52 = vsel %vm1616_vm1, %v4156_v50, 0.0  ;;  %v2073_v5 = vsel %vm1616_vm1, %v4156_v50, -inf  ;;  %v1486_v36 = vpop.f32.mrf.mxu2 }
 0x1ce   : > { %4690 = vst [vmem:[#allocation51_spill] sm:$0xff] %v4174_v19  ;;  %v1690_v6 = vsel %vm1616_vm1, %v4158_v41, 0.0  ;;  %v2010_v29 = vsel %vm1616_vm1, %v4158_v41, -inf  ;;  %v2114_v26 = vmax.f32 %v2112_v18, %v2113_v20  ;;  %v1517_v8 = vadd.f32 %v4120_v0, %v4109_v30 }
 0x1cf   : > { %v1845_v57 = vrot.slane %v1844_v16, 4  ;;  %v2165_v15 = vrot.slane %v2164_v46, 4  ;;  %v1754_v2 = vadd.f32 %v1753_v52, %v1752_v23  ;;  %v2074_v39 = vmax.f32 %v2072_v42, %v2073_v5  ;;  %v1522_v30 = vpop.f32.mrf.mxu3 }
 0x1d0   : > { %v1691_v27 = vadd.f32 %v1690_v6, %v1689_v1  ;;  %v2011_v44 = vmax.f32 %v2009_v24, %v2010_v29  ;;  %v1796_v54 = vadd.f32 %v1795_v63, %v1794_v9  ;;  %v1484_v50 = vadd.f32 %v4120_v0, %v1483_v56 }
 0x1d1   : > { %v1846_v49 = vadd.f32 %v1845_v57, %v1844_v16  ;;  %v2166_v38 = vmax.f32 %v2164_v46, %v2165_v15  ;;  %v1755_v43 = vrot.slane %v1754_v2, 4  ;;  %v2075_v11 = vrot.slane %v2074_v39, 4 }
 0x1d2   : > { %v1692_v33 = vrot.slane %v1691_v27, 4  ;;  %v2012_v32 = vrot.slane %v2011_v44, 4  ;;  %v2115_v47 = vrot.slane %v2114_v26, 1  ;;  %v4187_v41 = vmax.f32 %v1517_v8, 0.0 }
 0x1d3   : > { %v1847_v18 = vrot.slane %v1846_v49, 2  ;;  %v2167_v20 = vrot.slane %v2166_v38, 2  ;;  %v1756_v23 = vadd.f32 %v1755_v43, %v1754_v2  ;;  %v2076_v42 = vmax.f32 %v2074_v39, %v2075_v11 }
 0x1d4   : > { %4691 = vst [vmem:[#allocation52_spill] sm:$0xff] %v4187_v41  ;;  %v1693_v6 = vadd.f32 %v1692_v33, %v1691_v27  ;;  %v2013_v29 = vmax.f32 %v2011_v44, %v2012_v32  ;;  %v1797_v57 = vsel %vm1616_vm1, %v4174_v19, 0.0  ;;  %v2117_v56 = vsel %vm1616_vm1, %v4174_v19, -inf }
 0x1d5   : > { %v1848_v9 = vadd.f32 %v1847_v18, %v1846_v49  ;;  %v4193_v15 = vmax.f32 %v1484_v50, 0.0  ;;  %v4195_v1 = vmul.f32 0.0625, %v1796_v54  ;;  %v2168_v24 = vmax.f32 %v2166_v38, %v2167_v20 }
 0x1d6   : > { %v1694_v63 = vrot.slane %v1693_v6, 2  ;;  %v2014_v16 = vrot.slane %v2013_v29, 2  ;;  %v1757_v46 = vrot.slane %v1756_v23, 2  ;;  %v2077_v52 = vrot.slane %v2076_v42, 2 }
 0x1d7   : > { %4692 = vst [vmem:[#allocation53_spill] sm:$0xff] %v4193_v15  ;;  %v1798_v43 = vsel %vm1616_vm1, %v4193_v15, 0.0  ;;  %v2118_v32 = vsel %vm1616_vm1, %v4193_v15, -inf  ;;  %v4201_v33 = vmax.f32 %v2114_v26, %v2115_v47  ;;  %v1849_v49 = vrot.slane %v1848_v9, 1  ;;  %v1525_v18 = vpop.f32.mrf.mxu3 }
 0x1d8   : > { %v1695_v11 = vadd.f32 %v1694_v63, %v1693_v6  ;;  %v1851_v50 = vsel %vm1616_vm1, %v4187_v41, 0.0  ;;  %v2015_v54 = vmax.f32 %v2013_v29, %v2014_v16  ;;  %v2171_v38 = vsel %vm1616_vm1, %v4187_v41, -inf }
 0x1d9   : > { %v1799_v5 = vadd.f32 %v1798_v43, %v1797_v57  ;;  %v2119_v8 = vmax.f32 %v2117_v56, %v2118_v32  ;;  %v2169_v2 = vrot.slane %v2168_v24, 1  ;;  %v2232_v39 = vadd.f32 %v4152_v45, %v4160_v58  ;;  %v1489_v58 = vpop.f32.mrf.mxu2 }
 0x1da   : > { %v4209_v27 = vadd.f32 %v1757_v46, %v1756_v23  ;;  %v4211_v47 = vmax.f32 %v2076_v42, %v2077_v52  ;;  %v1850_v20 = vadd.f32 %v1849_v49, %v1848_v9  ;;  %v1696_v6 = vrot.slane %v1695_v11, 1 }
 0x1db   : > { %v1800_v26 = vrot.slane %v1799_v5, 4  ;;  %v2120_v44 = vrot.slane %v2119_v8, 4  ;;  %v2299_v29 = vsel %vm2298_vm5, %v3976_v35, %v3934_v61  ;;  %v2016_v57 = vrot.slane %v2015_v54, 1 }
 0x1dc   : > { %v2301_v45 = vsel %vm2300_vm6, %v4018_v31, %v2299_v29  ;;  %v1520_v42 = vadd.f32 %v4120_v0, %v4150_v21  ;;  %v1487_v9 = vadd.f32 %v4120_v0, %v1486_v36  ;;  %v1523_v35 = vadd.f32 %v4120_v0, %v1522_v30 }
 0x1dd   : > { %v1801_v56 = vadd.f32 %v1800_v26, %v1799_v5  ;;  %v2121_v63 = vmax.f32 %v2119_v8, %v2120_v44  ;;  %v2303_v23 = vsel %vm2302_vm7, %v4123_v28, %v2301_v45  ;;  %v4225_v52 = vmax.f32 %v2168_v24, %v2169_v2 }
 0x1de   : > { %v2305_v61 = vsel %vm2304_vm8, %v2232_v39, %v2303_v23  ;;  %v4228_v31 = vmax.f32 %v1520_v42, 0.0  ;;  %v4230_v43 = vmax.f32 %v1487_v9, 0.0  ;;  %v1490_v28 = vadd.f32 %v4120_v0, %v1489_v58  ;;  %v339_v23 = vld [vmem:[%s4589_s6] sm:$0xf] }
 0x1df   : > { %v1802_v16 = vrot.slane %v1801_v56, 2  ;;  %v2122_v46 = vrot.slane %v2121_v63, 2  ;;  %3090 = vmatmul.msk.f32.vlgmr.msrb.gmra.mxu1 %vm1616_vm1, %v2305_v61  ;;  %v4233_v32 = vmul.f32 0.0625, %v1850_v20  ;;  %v4235_v36 = vmax.f32 %v1523_v35, 0.0  ;;  %v4246_v20 = vpop.f32.mrf.mxu3  ;;  %3094 = vmatpush.msk.msrb.mxu2 %vm2384_vm9, %v339_v23 }
 0x1e0   : > { %4693 = vst [vmem:[#allocation54_spill] sm:$0xff] %v4228_v31  ;;  %v1526_v49 = vadd.f32 %v4120_v0, %v1525_v18  ;;  %v1697_v5 = vadd.f32 %v1696_v6, %v1695_v11  ;;  %v4238_v8 = vmax.f32 %v2015_v54, %v2016_v57  ;;  %v1852_v30 = vsel %vm1616_vm1, %v4228_v31, 0.0 }
 0x1e1   : > { %4694 = vst [vmem:[#allocation55_spill] sm:$0xff] %v4230_v43  ;;  %v1803_v21 = vadd.f32 %v1802_v16, %v1801_v56  ;;  %v2172_v24 = vsel %vm1616_vm1, %v4228_v31, -inf  ;;  %v2123_v2 = vmax.f32 %v2121_v63, %v2122_v46  ;;  %v1853_v39 = vadd.f32 %v1852_v30, %v1851_v50  ;;  %v1492_v61 = vpop.f32.mrf.mxu2 }
 0x1e2   : > { %4695 = vst [vmem:[#allocation56_spill] sm:$0xff] %v4235_v36  ;;  %v2173_v26 = vmax.f32 %v2171_v38, %v2172_v24  ;;  %v1806_v44 = vsel %vm1616_vm1, %v4230_v43, 0.0  ;;  %v2126_v11 = vsel %vm1616_vm1, %v4230_v43, -inf  ;;  %v4250_v54 = vmax.f32 %v1490_v28, 0.0 }
 0x1e3   : > { %v1804_v29 = vrot.slane %v1803_v21, 1  ;;  %v4252_v18 = vmax.f32 %v1526_v49, 0.0  ;;  %v1854_v6 = vrot.slane %v1853_v39, 4  ;;  %v1860_v56 = vsel %vm1616_vm1, %v4235_v36, 0.0 }
 0x1e4   : > { %4696 = vst [vmem:[#allocation57_spill] sm:$0xff] %v4250_v54  ;;  %v2174_v57 = vrot.slane %v2173_v26, 4  ;;  %v2180_v50 = vsel %vm1616_vm1, %v4235_v36, -inf  ;;  %v1807_v38 = vsel %vm1616_vm1, %v4250_v54, 0.0  ;;  %v2127_v63 = vsel %vm1616_vm1, %v4250_v54, -inf }
 0x1e5   : > { %4697 = vst [vmem:[#allocation58_spill] sm:$0xff] %v4252_v18  ;;  %v1861_v45 = vsel %vm1616_vm1, %v4252_v18, 0.0  ;;  %v2181_v58 = vsel %vm1616_vm1, %v4252_v18, -inf  ;;  %v2124_v42 = vrot.slane %v2123_v2, 1  ;;  %v1855_v9 = vadd.f32 %v1854_v6, %v1853_v39 }
 0x1e6   : > { %v2175_v16 = vmax.f32 %v2173_v26, %v2174_v57  ;;  %v1808_v46 = vadd.f32 %v1807_v38, %v1806_v44  ;;  %v2128_v35 = vmax.f32 %v2126_v11, %v2127_v63  ;;  %v1862_v28 = vadd.f32 %v1861_v45, %v1860_v56 }
 0x1e7   : > { %v2182_v49 = vmax.f32 %v2180_v50, %v2181_v58  ;;  %v1805_v30 = vadd.f32 %v1804_v29, %v1803_v21  ;;  %v1856_v24 = vrot.slane %v1855_v9, 2  ;;  %v1493_v43 = vadd.f32 %v4120_v0, %v1492_v61  ;;  %v1531_v44 = vpop.f32.mrf.mxu3 }
 0x1e8   : > { %v2176_v36 = vrot.slane %v2175_v16, 2  ;;  %v1809_v31 = vrot.slane %v1808_v46, 4  ;;  %v2129_v41 = vrot.slane %v2128_v35, 4  ;;  %v1863_v18 = vrot.slane %v1862_v28, 4 }
 0x1e9   : > { %v2183_v54 = vrot.slane %v2182_v49, 4  ;;  %v1857_v15 = vadd.f32 %v1856_v24, %v1855_v9  ;;  %v1759_v26 = vrot.slane %v4209_v27, 1  ;;  %v1913_v11 = vmul.f32 0.0625, %v1697_v5 }
 0x1ea   : > { %v2177_v19 = vmax.f32 %v2175_v16, %v2176_v36  ;;  %v1810_v39 = vadd.f32 %v1809_v31, %v1808_v46  ;;  %v2130_v6 = vmax.f32 %v2128_v35, %v2129_v41  ;;  %v1864_v57 = vadd.f32 %v1863_v18, %v1862_v28  ;;  %v1495_v46 = vpop.f32.mrf.mxu2 }
 0x1eb   : > { %v2184_v56 = vmax.f32 %v2182_v49, %v2183_v54  ;;  %v1925_v21 = vmul.f32 0.0625, %v1805_v30  ;;  %v1858_v29 = vrot.slane %v1857_v15, 1  ;;  %v4271_v38 = vmax.f32 %v1493_v43, 0.0 }
 0x1ec   : > { %v1811_v50 = vrot.slane %v1810_v39, 2  ;;  %v2178_v63 = vrot.slane %v2177_v19, 1  ;;  %v2131_v45 = vrot.slane %v2130_v6, 2  ;;  %v1865_v58 = vrot.slane %v1864_v57, 2 }
 0x1ed   : > { %v2185_v23 = vrot.slane %v2184_v56, 2  ;;  %v2125_v61 = vmax.f32 %v2123_v2, %v2124_v42  ;;  %v1859_v9 = vadd.f32 %v1858_v29, %v1857_v15  ;;  %v1760_v31 = vadd.f32 %v1759_v26, %v4209_v27 }
 0x1ee   : > { %v1812_v36 = vadd.f32 %v1811_v50, %v1810_v39  ;;  %v4276_v5 = vadd.f32 %v4132_v62, %v4140_v37  ;;  %v2132_v41 = vmax.f32 %v2130_v6, %v2131_v45  ;;  %v1866_v54 = vadd.f32 %v1865_v58, %v1864_v57 }
 0x1ef   : > { %v4278_v18 = vmax.f32 %v2184_v56, %v2185_v23  ;;  %v4282_v43 = vadd.f32 %v4201_v33, %v4195_v1  ;;  %v4286_v16 = vadd.f32 %v4225_v52, %v4233_v32  ;;  %v2233_v15 = vadd.f32 %v4238_v8, %v1913_v11  ;;  %v1534_v8 = vpop.f32.mrf.mxu3 }
 0x1f0   : > { %v4289_v2 = vadd.f32 %v2125_v61, %v1925_v21  ;;  %v4291_v27 = vmax.f32 %v2177_v19, %v2178_v63  ;;  %v1815_v62 = vsel %vm1616_vm1, %v4271_v38, 0.0  ;;  %v1919_v37 = vmul.f32 0.0625, %v4146_v14 }
 0x1f1   : > { %v2079_v42 = vrot.slane %v4211_v47, 1  ;;  %v4297_v1 = vmul.f32 0.0625, %v1859_v9  ;;  %v1813_v33 = vrot.slane %v1812_v36, 1  ;;  %v2135_v52 = vsel %vm1616_vm1, %v4271_v38, -inf }
 0x1f2   : > { %v1920_v32 = vmul.f32 0.0625, %v1760_v31  ;;  %v2133_v35 = vrot.slane %v2132_v41, 1  ;;  %v1867_v28 = vrot.slane %v1866_v54, 1  ;;  %v2187_v19 = vrot.slane %v4278_v18, 1 }
 0x1f3   : > { %v4698_v49 = vrot.slane %v4129_v34, 1  ;;  %v2080_v14 = vmax.f32 %v4211_v47, %v2079_v42  ;;  %v2306_v24 = vsel %vm2292_vm2, %v3873_v60, %v2233_v15  ;;  %v1529_v39 = vadd.f32 %v4120_v0, %v4246_v20 }
 0x1f4   : > { %v1496_v26 = vadd.f32 %v4120_v0, %v1495_v46  ;;  %v2238_v11 = vadd.f32 %v4063_v48, %v4071_v22  ;;  %v2307_v57 = vsel %vm2294_vm3, %v3926_v4, %v2306_v24  ;;  %v1532_v56 = vadd.f32 %v4120_v0, %v1531_v44 }
 0x1f5   : > { %v2071_v30 = vmax.f32 %v4129_v34, %v4698_v49  ;;  %v2240_v34 = vadd.f32 %v2080_v14, %v1920_v32  ;;  %v2308_v47 = vsel %vm2296_vm4, %v3965_v40, %v2307_v57  ;;  %v4318_v21 = vmax.f32 %v1529_v39, 0.0 }
 0x1f6   : > { %v4320_v60 = vmax.f32 %v1496_v26, 0.0  ;;  %v2309_v20 = vsel %vm2298_vm5, %v4014_v3, %v2308_v47  ;;  %v4324_v29 = vmax.f32 %v1532_v56, 0.0  ;;  %v1535_v48 = vadd.f32 %v4120_v0, %v1534_v8 }
 0x1f7   : > { %v2239_v6 = vadd.f32 %v2071_v30, %v1919_v37  ;;  %v1831_v22 = vrot.slane %v4055_v12, 1  ;;  %v2310_v4 = vsel %vm2300_vm6, %v2238_v11, %v2309_v20  ;;  %v1869_v44 = vsel %vm1616_vm1, %v4318_v21, 0.0  ;;  %v1537_v15 = vpop.f32.mrf.mxu3 }
 0x1f8   : > { %v2189_v40 = vsel %vm1616_vm1, %v4318_v21, -inf  ;;  %v1816_v50 = vsel %vm1616_vm1, %v4320_v60, 0.0  ;;  %v2136_v45 = vsel %vm1616_vm1, %v4320_v60, -inf  ;;  %v1870_v58 = vsel %vm1616_vm1, %v4324_v29, 0.0 }
 0x1f9   : > { %v2311_v63 = vsel %vm2302_vm7, %v2239_v6, %v2310_v4  ;;  %v1817_v3 = vadd.f32 %v1816_v50, %v1815_v62  ;;  %v2137_v61 = vmax.f32 %v2135_v52, %v2136_v45  ;;  %v1871_v9 = vadd.f32 %v1870_v58, %v1869_v44 }
 0x1fa   : > { %v2312_v23 = vsel %vm2304_vm8, %v2240_v34, %v2311_v63  ;;  %v2190_v31 = vsel %vm1616_vm1, %v4324_v29, -inf  ;;  %v4344_v46 = vmax.f32 %v1535_v48, 0.0  ;;  %v1538_v62 = vadd.f32 %v4120_v0, %v1537_v15 }
 0x1fb   : > { %3091 = vmatmul.msk.f32.gmra.mxu1 %vm1616_vm1, %v2312_v23  ;;  %v1818_v37 = vrot.slane %v1817_v3, 4  ;;  %v2191_v42 = vmax.f32 %v2189_v40, %v2190_v31  ;;  %v1814_v32 = vadd.f32 %v1813_v33, %v1812_v36  ;;  %v2134_v8 = vmax.f32 %v2132_v41, %v2133_v35 }
 0x1fc   : > { %v2138_v49 = vrot.slane %v2137_v61, 4  ;;  %v1872_v30 = vrot.slane %v1871_v9, 4  ;;  %v1868_v14 = vadd.f32 %v1867_v28, %v1866_v54  ;;  %v1878_v39 = vsel %vm1616_vm1, %v4344_v46, 0.0 }
 0x1fd   : > { %v1819_v24 = vadd.f32 %v1818_v37, %v1817_v3  ;;  %v2192_v52 = vrot.slane %v2191_v42, 4  ;;  %v2198_v6 = vsel %vm1616_vm1, %v4344_v46, -inf  ;;  %v4351_v57 = vmax.f32 %v1538_v62, 0.0 }
 0x1fe   : > { %v2139_v26 = vmax.f32 %v2137_v61, %v2138_v49  ;;  %v1873_v11 = vadd.f32 %v1872_v30, %v1871_v9  ;;  %v2188_v56 = vmax.f32 %v4278_v18, %v2187_v19  ;;  %v1832_v41 = vadd.f32 %v1831_v22, %v4055_v12 }
 0x1ff   : > { %v1820_v34 = vrot.slane %v1819_v24, 2  ;;  %v2193_v36 = vmax.f32 %v2191_v42, %v2192_v52  ;;  %v1879_v35 = vsel %vm1616_vm1, %v4351_v57, 0.0  ;;  %v2199_v28 = vsel %vm1616_vm1, %v4351_v57, -inf  ;;  %v1540_v19 = vpop.f32.mrf.mxu3 }
 0x200   : > { %v2140_v33 = vrot.slane %v2139_v26, 2  ;;  %v1874_v54 = vrot.slane %v1873_v11, 2  ;;  %v1880_v48 = vadd.f32 %v1879_v35, %v1878_v39  ;;  %v2200_v4 = vmax.f32 %v2198_v6, %v2199_v28 }
 0x201   : > { %v1821_v47 = vadd.f32 %v1820_v34, %v1819_v24  ;;  %v2194_v20 = vrot.slane %v2193_v36, 2  ;;  %v1926_v44 = vmul.f32 0.0625, %v1814_v32  ;;  %v2151_v18 = vrot.slane %v4057_v55, 1 }
 0x202   : > { %v2141_v40 = vmax.f32 %v2139_v26, %v2140_v33  ;;  %v1875_v50 = vadd.f32 %v1874_v54, %v1873_v11  ;;  %v1881_v12 = vrot.slane %v1880_v48, 4  ;;  %v2201_v22 = vrot.slane %v2200_v4, 4 }
 0x203   : > { %v1822_v63 = vrot.slane %v1821_v47, 1  ;;  %v1928_v3 = vmul.f32 0.0625, %v1832_v41  ;;  %v2195_v23 = vmax.f32 %v2193_v36, %v2194_v20  ;;  %v1541_v61 = vadd.f32 %v4120_v0, %v1540_v19 }
 0x204   : > { %v2142_v45 = vrot.slane %v2141_v40, 1  ;;  %v1876_v58 = vrot.slane %v1875_v50, 1  ;;  %v1882_v31 = vadd.f32 %v1881_v12, %v1880_v48  ;;  %v2202_v15 = vmax.f32 %v2200_v4, %v2201_v22 }
 0x205   : > { %v1823_v9 = vadd.f32 %v1822_v63, %v1821_v47  ;;  %v2313_v37 = vsel %vm2292_vm2, %v4049_v59, %v3982_v53  ;;  %v2152_v62 = vmax.f32 %v4057_v55, %v2151_v18  ;;  %v2246_v32 = vadd.f32 %v2134_v8, %v1926_v44 }
 0x206   : > { %v1877_v42 = vadd.f32 %v1876_v58, %v1875_v50  ;;  %v2314_v49 = vsel %vm2294_vm3, %v4125_v25, %v2313_v37  ;;  %v1883_v30 = vrot.slane %v1882_v31, 2  ;;  %v2203_v24 = vrot.slane %v2202_v15, 2 }
 0x207   : > { %v1927_v52 = vmul.f32 0.0625, %v1823_v9  ;;  %v2143_v39 = vmax.f32 %v2141_v40, %v2142_v45  ;;  %v1932_v26 = vmul.f32 0.0625, %v1868_v14  ;;  %v2196_v11 = vrot.slane %v2195_v23, 1  ;;  %v1543_v14 = vpop.f32.mrf.mxu3 }
 0x208   : > { %v2315_v6 = vsel %vm2296_vm4, %v4282_v43, %v2314_v49  ;;  %v4369_v34 = vmax.f32 %v1541_v61, 0.0  ;;  %v1884_v36 = vadd.f32 %v1883_v30, %v1882_v31  ;;  %v2204_v53 = vmax.f32 %v2202_v15, %v2203_v24 }
 0x209   : > { %v2247_v59 = vadd.f32 %v2143_v39, %v1927_v52  ;;  %v2316_v55 = vsel %vm2298_vm5, %v4289_v2, %v2315_v6  ;;  %v2251_v25 = vadd.f32 %v4291_v27, %v4297_v1  ;;  %v1933_v8 = vmul.f32 0.0625, %v1877_v42 }
 0x20a   : > { %v2248_v41 = vadd.f32 %v2152_v62, %v1928_v3  ;;  %v2317_v33 = vsel %vm2300_vm6, %v2246_v32, %v2316_v55  ;;  %v1885_v54 = vrot.slane %v1884_v36, 1  ;;  %v2205_v35 = vrot.slane %v2204_v53, 1 }
 0x20b   : > { %v2318_v43 = vsel %vm2302_vm7, %v2247_v59, %v2317_v33  ;;  %v1544_v28 = vadd.f32 %v4120_v0, %v1543_v14  ;;  %v2252_v47 = vadd.f32 %v2188_v56, %v1932_v26  ;;  %v2197_v20 = vmax.f32 %v2195_v23, %v2196_v11 }
 0x20c   : > { %v2319_v48 = vsel %vm2304_vm8, %v2248_v41, %v2318_v43  ;;  %v1887_v2 = vsel %vm1616_vm1, %v4369_v34, 0.0  ;;  %v1886_v4 = vadd.f32 %v1885_v54, %v1884_v36  ;;  %v2206_v27 = vmax.f32 %v2204_v53, %v2205_v35 }
 0x20d   : > { %3092 = vmatmul.msk.f32.gmra.mxu1 %vm1616_vm1, %v2319_v48  ;;  %v2207_v1 = vsel %vm1616_vm1, %v4369_v34, -inf  ;;  %v4384_v44 = vmax.f32 %v1544_v28, 0.0  ;;  %v2253_v40 = vadd.f32 %v2197_v20, %v1933_v8  ;;  %v2320_v19 = vsel %vm2292_vm2, %v4286_v16, %v4276_v5 }
 0x20e   : > { %v1934_v50 = vmul.f32 0.0625, %v1886_v4  ;;  %v2321_v22 = vsel %vm2294_vm3, %v2251_v25, %v2320_v19 }
 0x20f   : > { %v1888_v56 = vsel %vm1616_vm1, %v4384_v44, 0.0  ;;  %v2208_v18 = vsel %vm1616_vm1, %v4384_v44, -inf  ;;  %v2322_v45 = vsel %vm2296_vm4, %v2252_v47, %v2321_v22  ;;  %v1546_v23 = vpop.f32.mrf.mxu3 }
 0x210   : > { %v1889_v63 = vadd.f32 %v1888_v56, %v1887_v2  ;;  %v2209_v12 = vmax.f32 %v2207_v1, %v2208_v18  ;;  %v2254_v3 = vadd.f32 %v2206_v27, %v1934_v50  ;;  %v2323_v61 = vsel %vm2298_vm5, %v2253_v40, %v2322_v45  ;;  %v3178_v18 = vld [vmem:[%s4588_s5] ss:$0 sm:$0xff] }
 0x211   : > { %v1547_v37 = vadd.f32 %v4120_v0, %v1546_v23 }
 0x212   : > { %v1890_v58 = vrot.slane %v1889_v63, 4  ;;  %v2324_v9 = vsel %vm2300_vm6, %v2254_v3, %v2323_v61  ;;  %v2210_v31 = vrot.slane %v2209_v12, 4 }
 0x213   : > { %v4398_v5 = vmax.f32 %v1547_v37, 0.0  ;;  %v4420_v37 = vld [vmem:[%s4590_s7] ss:$0 sm:$0xff] }
 0x214   : > { %v1891_v15 = vadd.f32 %v1890_v58, %v1889_v63  ;;  %v2211_v42 = vmax.f32 %v2209_v12, %v2210_v31 }
 0x215   : > { %v1896_v24 = vsel %vm1616_vm1, %v4398_v5, 0.0  ;;  %v2216_v52 = vsel %vm1616_vm1, %v4398_v5, -inf }
 0x216   : > { %v1892_v62 = vrot.slane %v1891_v15, 2  ;;  %v2212_v49 = vrot.slane %v2211_v42, 2 }
 0x217   : > { %v1549_v16 = vpop.f32.mrf.mxu3 }
 0x218   : > { %v1550_v32 = vadd.f32 %v4120_v0, %v1549_v16  ;;  %v1893_v30 = vadd.f32 %v1892_v62, %v1891_v15  ;;  %v2213_v0 = vmax.f32 %v2211_v42, %v2212_v49 }
 0x21a   : > { %v4405_v39 = vmax.f32 %v1550_v32, 0.0  ;;  %v1894_v53 = vrot.slane %v1893_v30, 1  ;;  %v2214_v33 = vrot.slane %v2213_v0, 1 }
 0x21c   : > { %v1897_v26 = vsel %vm1616_vm1, %v4405_v39, 0.0  ;;  %v2217_v11 = vsel %vm1616_vm1, %v4405_v39, -inf  ;;  %v1895_v41 = vadd.f32 %v1894_v53, %v1893_v30  ;;  %v2215_v47 = vmax.f32 %v2213_v0, %v2214_v33 }
 0x21d   : > { %v1898_v6 = vadd.f32 %v1897_v26, %v1896_v24  ;;  %v2218_v36 = vmax.f32 %v2216_v52, %v2217_v11 }
 0x21e   : > { %v1935_v28 = vmul.f32 0.0625, %v1895_v41 }
 0x21f   : > { %v1899_v59 = vrot.slane %v1898_v6, 4  ;;  %v2219_v55 = vrot.slane %v2218_v36, 4 }
 0x220   : > { %v2255_v4 = vadd.f32 %v2215_v47, %v1935_v28 }
 0x221   : > { %v1900_v25 = vadd.f32 %v1899_v59, %v1898_v6  ;;  %v2220_v8 = vmax.f32 %v2218_v36, %v2219_v55 }
 0x222   : > { %v2325_v50 = vsel %vm2302_vm7, %v2255_v4, %v2324_v9 }
 0x223   : > { %v1901_v14 = vrot.slane %v1900_v25, 2  ;;  %v2221_v54 = vrot.slane %v2220_v8, 2 }
 0x225   : > { %v1902_v35 = vadd.f32 %v1901_v14, %v1900_v25  ;;  %v2222_v43 = vmax.f32 %v2220_v8, %v2221_v54 }
 0x227   : > { %v1903_v20 = vrot.slane %v1902_v35, 1  ;;  %v2223_v48 = vrot.slane %v2222_v43, 1 }
 0x229   : > { %v1904_v2 = vadd.f32 %v1903_v20, %v1902_v35  ;;  %v2224_v1 = vmax.f32 %v2222_v43, %v2223_v48 }
 0x22b   : > { %v1936_v27 = vmul.f32 0.0625, %v1904_v2 }
 0x22d   : > { %v2256_v40 = vadd.f32 %v2224_v1, %v1936_v27 }
 0x22f   : > { %v2326_v56 = vsel %vm2304_vm8, %v2256_v40, %v2325_v50 }
 0x230   : > { %3093 = vmatmul.msk.f32.gmra.mxu1 %vm1616_vm1, %v2326_v56 }
 0x25c   : > { %v2352_v19 = vpop.f32.mrf.mxu1 }
 0x25d   : > { %v2353_v63 = vadd.f32 %v3178_v18, %v2352_v19 }
 0x25f   : > { %v2364_v12 = vmax.f32 %v2353_v63, 0.0 }
 0x261   : > { %3095 = vmatmul.msk.f32.vlgmr.msrb.gmra.mxu2 %vm2371_vm10, %v2364_v12 }
 0x278   : > { %v2355_v22 = vpop.f32.mrf.mxu1 }
 0x279   : > { %v2356_v3 = vadd.f32 %v3178_v18, %v2355_v22 }
 0x27b   : > { %v2365_v45 = vmax.f32 %v2356_v3, 0.0 }
 0x27d   : > { %3096 = vmatmul.msk.f32.gmra.mxu2 %vm2371_vm10, %v2365_v45 }
 0x28a   : > { %v2358_v58 = vpop.f32.mrf.mxu1 }
 0x28b   : > { %v2359_v23 = vadd.f32 %v3178_v18, %v2358_v58 }
 0x28d   : > { %v2366_v61 = vmax.f32 %v2359_v23, 0.0 }
 0x28f   : > { %3097 = vmatmul.msk.f32.gmra.mxu2 %vm2371_vm10, %v2366_v61 }
 0x2ad   : > { %v2361_v9 = vpop.f32.mrf.mxu1 }
 0x2ae   : > { %v2362_v31 = vadd.f32 %v3178_v18, %v2361_v9 }
 0x2b0   : > { %v2367_v15 = vmax.f32 %v2362_v31, 0.0 }
 0x2b2   : > { %3098 = vmatmul.msk.f32.gmra.mxu2 %vm2371_vm10, %v2367_v15 }
 0x2e4   : > { %v2405_v42 = vpop.f32.mrf.mxu2 }
 0x2e5   : > { %v2406_v62 = vadd.f32 %v4420_v37, %v2405_v42 }
 0x2e7   : > { %v3099_v16 = vmul.f32 -1.442695, %v2406_v62 }
 0x2e9   : > { %3180 = vpow2.f32 %v3099_v16 }
 0x2ef   : > { %v3181_v32 = vpop.eup %3180 }
 0x2f0   : > { %v2429_v49 = vadd.f32 1.0, %v3181_v32  ;;  %v4700_v32 = vld [vmem:[#allocation50_spill] sm:$0xff] }
 0x2f2   : > { %3182 = vrcp.f32 %v2429_v49  ;;  %v2444_v26 = vand.u32 2147483648, %v2429_v49  ;;  %v2442_v6 = vand.u32 2147483647, %v2429_v49  ;;  %vm2438_vm12 = vweird.f32 %v2429_v49 }
 0x2f4   : > { %v2445_v53 = vor.u32 1.1754944e-38, %v2444_v26  ;;  %vm2443_vm14 = vcmp.eq.f32.partialorder %v2442_v6, 8.507059e+37  ;;  %v4701_v6 = vld [vmem:[#allocation13_spill] sm:$0xff] }
 0x2f8   : > { %v3183_v30 = vpop.eup %3182 }
 0x2f9   : > { %v2434_v24 = vmul.f32 %v3183_v30, %v2429_v49  ;;  %vm2439_vm11 = vweird.f32 %v3183_v30 }
 0x2fa   : > { %vm2440_vm13 = vmor %vm2438_vm12, %vm2439_vm11 }
 0x2fb   : > { %v2435_v52 = vsub.f32 1.0, %v2434_v24 }
 0x2fd   : > { %v2436_v11 = vmul.f32 %v3183_v30, %v2435_v52 }
 0x2ff   : > { %v2437_v36 = vadd.f32 %v3183_v30, %v2436_v11 }
 0x300   : > { %v2408_v0 = vpop.f32.mrf.mxu2 }
 0x301   : > { %v2441_v59 = vsel %vm2440_vm13, %v3183_v30, %v2437_v36  ;;  %v2409_v55 = vadd.f32 %v4420_v37, %v2408_v0 }
 0x302   : > { %v4424_v25 = vsel %vm2443_vm14, %v2445_v53, %v2441_v59 }
 0x303   : > { %v3100_v8 = vmul.f32 -1.442695, %v2409_v55  ;;  %v2525_v41 = vperm.slane %v4424_v25, 0  ;;  %v2497_v47 = vrot.slane %v4424_v25, 1  ;;  %v2498_v12 = vrot.slane %v4424_v25, 2 }
 0x305   : > { %3184 = vpow2.f32 %v3100_v8  ;;  %v2589_v33 = vmul.f32 %v2525_v41, %v3760_v10  ;;  %v2590_v35 = vmul.f32 %v2525_v41, %v3755_v7  ;;  %v2526_v20 = vperm.slane %v2497_v47, 0 }
 0x306   : > { %v2527_v9 = vperm.slane %v2498_v12, 0  ;;  %v4707_v12 = vld [vmem:[#allocation17_spill] sm:$0xff] }
 0x307   : > { %v2653_v14 = vmax.f32 %v2589_v33, 0.0  ;;  %v2654_v28 = vmax.f32 %v2590_v35, 0.0  ;;  %v2591_v4 = vmul.f32 %v2526_v20, %v3769_v17  ;;  %v2592_v63 = vmul.f32 %v2526_v20, %v3765_v13  ;;  %v4699_v13 = vld [vmem:[#allocation11_spill] sm:$0xff] }
 0x308   : > { %v2593_v42 = vmul.f32 %v2527_v9, %v4699_v13  ;;  %v2594_v36 = vmul.f32 %v2527_v9, %v4701_v6  ;;  %v4703_v20 = vld [vmem:[#allocation15_spill] sm:$0xff] }
 0x309   : > { %2717 = vxpose.xlu0.b32.start [1/16] (narrow) %v2653_v14, 32  ;;  %v2655_v50 = vmax.f32 %v2591_v4, 0.0  ;;  %v2656_v61 = vmax.f32 %v2592_v63, 0.0  ;;  %v4702_v14 = vld [vmem:[#allocation10_spill] sm:$0xff] }
 0x30a   : > { %v2657_v30 = vmax.f32 %v2593_v42, 0.0  ;;  %v2658_v41 = vmax.f32 %v2594_v36, 0.0 }
 0x30b   : > { %v3185_v54 = vpop.eup %3184 }
 0x30c   : > { %v2430_v43 = vadd.f32 1.0, %v3185_v54 }
 0x30e   : > { %3186 = vrcp.f32 %v2430_v43  ;;  %v2459_v56 = vand.u32 2147483648, %v2430_v43  ;;  %v2457_v18 = vand.u32 2147483647, %v2430_v43  ;;  %vm2453_vm0 = vweird.f32 %v2430_v43 }
 0x310   : > { %v2460_v22 = vor.u32 1.1754944e-38, %v2459_v56  ;;  %vm2458_vm2 = vcmp.eq.f32.partialorder %v2457_v18, 8.507059e+37  ;;  %v4706_v56 = vld [vmem:[#allocation23_spill] sm:$0xff] }
 0x311   : > { %2718 = vxpose.xlu0.b32.cont [2/16] (narrow) %v2654_v28, 32 }
 0x312   : > { %v2411_v48 = vpop.f32.mrf.mxu2 }
 0x313   : > { %v2412_v2 = vadd.f32 %v4420_v37, %v2411_v48 }
 0x314   : > { %v3187_v27 = vpop.eup %3186 }
 0x315   : > { %v2449_v1 = vmul.f32 %v3187_v27, %v2430_v43  ;;  %v3101_v10 = vmul.f32 -1.442695, %v2412_v2  ;;  %vm2454_vm15 = vweird.f32 %v3187_v27  ;;  %v4704_v2 = vld [vmem:[#allocation21_spill] sm:$0xff] }
 0x316   : > { %vm2455_vm1 = vmor %vm2453_vm0, %vm2454_vm15 }
 0x317   : > { %v2450_v40 = vsub.f32 1.0, %v2449_v1  ;;  %3188 = vpow2.f32 %v3101_v10  ;;  %v4705_v1 = vld [vmem:[#allocation12_spill] sm:$0xff] }
 0x319   : > { %v2451_v7 = vmul.f32 %v3187_v27, %v2450_v40  ;;  %2719 = vxpose.xlu0.b32.cont [3/16] (narrow) %v2655_v50, 32 }
 0x31b   : > { %v2452_v19 = vadd.f32 %v3187_v27, %v2451_v7 }
 0x31d   : > { %v3189_v17 = vpop.eup %3188  ;;  %v2456_v3 = vsel %vm2455_vm1, %v3187_v27, %v2452_v19 }
 0x31e   : > { %v2431_v45 = vadd.f32 1.0, %v3189_v17  ;;  %v4434_v58 = vsel %vm2458_vm2, %v2460_v22, %v2456_v3  ;;  %v2500_v17 = vrot.slane %v4424_v25, 4 }
 0x31f   : > { %v2533_v23 = vperm.slane %v4434_v58, 0  ;;  %v2504_v24 = vrot.slane %v4434_v58, 1  ;;  %v2505_v50 = vrot.slane %v4434_v58, 2 }
 0x320   : > { %3190 = vrcp.f32 %v2431_v45  ;;  %v2472_v26 = vand.u32 2147483647, %v2431_v45  ;;  %v2474_v11 = vand.u32 2147483648, %v2431_v45  ;;  %vm2468_vm4 = vweird.f32 %v2431_v45 }
 0x321   : > { %v2605_v31 = vmul.f32 %v2533_v23, %v4142_v51  ;;  %2720 = vxpose.xlu0.b32.cont [4/16] (narrow) %v2656_v61, 32  ;;  %v2606_v49 = vmul.f32 %v2533_v23, %v4700_v32  ;;  %v2499_v51 = vrot.slane %v4424_v25, 3  ;;  %v2534_v59 = vperm.slane %v2504_v24, 0  ;;  %v4708_v23 = vld [vmem:[#allocation14_spill] sm:$0xff] }
 0x322   : > { %v2475_v8 = vor.u32 1.1754944e-38, %v2474_v11  ;;  %vm2473_vm6 = vcmp.eq.f32.partialorder %v2472_v26, 8.507059e+37  ;;  %v2535_v63 = vperm.slane %v2505_v50, 0  ;;  %v4712_v11 = vld [vmem:[#allocation29_spill] sm:$0xff]  ;;  %v2507_v50 = vrot.slane %v4434_v58, 4 }
 0x323   : > { %v2669_v15 = vmax.f32 %v2605_v31, 0.0  ;;  %v2670_v0 = vmax.f32 %v2606_v49, 0.0  ;;  %v2607_v54 = vmul.f32 %v2534_v59, %v4702_v14  ;;  %v2528_v35 = vperm.slane %v2499_v51, 0  ;;  %v4711_v49 = vld [vmem:[#allocation16_spill] sm:$0xff] }
 0x324   : > { %v2608_v10 = vmul.f32 %v2534_v59, %v4705_v1  ;;  %v2609_v61 = vmul.f32 %v2535_v63, %v4708_v23  ;;  %v2529_v31 = vperm.slane %v2500_v17, 0  ;;  %v2501_v51 = vrot.slane %v4424_v25, 5  ;;  %v4717_v1 = vld [vmem:[#allocation20_spill] sm:$0xff] }
 0x325   : > { %2749 = vxpose.xlu1.b32.start [1/16] (narrow) %v2669_v15, 32  ;;  %v2671_v47 = vmax.f32 %v2607_v54, 0.0  ;;  %v2595_v48 = vmul.f32 %v2528_v35, %v4703_v20  ;;  %v2596_v22 = vmul.f32 %v2528_v35, %v4707_v12  ;;  %v4709_v15 = vld [vmem:[#allocation26_spill] sm:$0xff]  ;;  %v4715_v20 = vld [vmem:[#allocation35_spill] sm:$0xff]  ;;  %v2537_v12 = vperm.slane %v2507_v50, 0 }
 0x326   : > { %v3191_v62 = vpop.eup %3190  ;;  %v2672_v19 = vmax.f32 %v2608_v10, 0.0  ;;  %v2673_v42 = vmax.f32 %v2609_v61, 0.0  ;;  %v4714_v54 = vld [vmem:[#allocation18_spill] sm:$0xff] }
 0x327   : > { %v2464_v16 = vmul.f32 %v3191_v62, %v2431_v45  ;;  %vm2469_vm3 = vweird.f32 %v3191_v62  ;;  %v2659_v40 = vmax.f32 %v2595_v48, 0.0  ;;  %v2660_v9 = vmax.f32 %v2596_v22, 0.0  ;;  %v4719_v22 = vld [vmem:[#allocation28_spill] sm:$0xff] }
 0x328   : > { %vm2470_vm5 = vmor %vm2468_vm4, %vm2469_vm3 }
 0x329   : > { %v2465_v52 = vsub.f32 1.0, %v2464_v16  ;;  %2721 = vxpose.xlu0.b32.cont [5/16] (narrow) %v2657_v30, 32  ;;  %v2610_v30 = vmul.f32 %v2535_v63, %v4711_v49 }
 0x32b   : > { %v2466_v53 = vmul.f32 %v3191_v62, %v2465_v52  ;;  %v2506_v52 = vrot.slane %v4434_v58, 3 }
 0x32d   : > { %v2467_v55 = vadd.f32 %v3191_v62, %v2466_v53  ;;  %2750 = vxpose.xlu1.b32.cont [2/16] (narrow) %v2670_v0, 32  ;;  %v2674_v53 = vmax.f32 %v2610_v30, 0.0  ;;  %v2536_v59 = vperm.slane %v2506_v52, 0  ;;  %v4723_v52 = vld [vmem:[#allocation27_spill] sm:$0xff] }
 0x32f   : > { %v2471_v33 = vsel %vm2470_vm5, %v3191_v62, %v2467_v55  ;;  %v4710_v62 = vld [vmem:[#allocation19_spill] sm:$0xff]  ;;  %v4713_v55 = vld [vmem:[#allocation22_spill] sm:$0xff]  ;;  %v2611_v35 = vmul.f32 %v2536_v59, %v4714_v54  ;;  %v2612_v10 = vmul.f32 %v2536_v59, %v4717_v1  ;;  %v2503_v59 = vrot.slane %v4424_v25, 7 }
 0x330   : > { %v4444_v43 = vsel %vm2473_vm6, %v2475_v8, %v2471_v33  ;;  %v2597_v16 = vmul.f32 %v2529_v31, %v4710_v62  ;;  %v2598_v8 = vmul.f32 %v2529_v31, %v4713_v55 }
 0x331   : > { %2722 = vxpose.xlu0.b32.cont [6/16] (narrow) %v2658_v41, 32  ;;  %v2541_v28 = vperm.slane %v4444_v43, 0  ;;  %v2511_v18 = vrot.slane %v4444_v43, 1  ;;  %v2512_v36 = vrot.slane %v4444_v43, 2  ;;  %v2676_v63 = vmax.f32 %v2612_v10, 0.0 }
 0x332   : > { %v2661_v24 = vmax.f32 %v2597_v16, 0.0 }
 0x333   : > { %v2621_v4 = vmul.f32 %v2541_v28, %v4704_v2  ;;  %v2622_v7 = vmul.f32 %v2541_v28, %v4706_v56  ;;  %v2542_v45 = vperm.slane %v2511_v18, 0  ;;  %v2543_v33 = vperm.slane %v2512_v36, 0 }
 0x334   : > { %v2662_v28 = vmax.f32 %v2598_v8, 0.0  ;;  %v2675_v2 = vmax.f32 %v2611_v35, 0.0 }
 0x335   : > { %2751 = vxpose.xlu1.b32.cont [3/16] (narrow) %v2671_v47, 32  ;;  %v2685_v27 = vmax.f32 %v2621_v4, 0.0  ;;  %v2686_v3 = vmax.f32 %v2622_v7, 0.0  ;;  %v2623_v13 = vmul.f32 %v2542_v45, %v4709_v15  ;;  %v2414_v26 = vpop.f32.mrf.mxu2  ;;  %v2624_v6 = vmul.f32 %v2542_v45, %v4712_v11  ;;  %v4716_v4 = vld [vmem:[#allocation25_spill] sm:$0xff] }
 0x336   : > { %v2415_v0 = vadd.f32 %v4420_v37, %v2414_v26  ;;  %v2530_v47 = vperm.slane %v2501_v51, 0  ;;  %v2625_v48 = vmul.f32 %v2543_v33, %v4715_v20  ;;  %v4718_v7 = vld [vmem:[#allocation37_spill] sm:$0xff]  ;;  %v2614_v26 = vmul.f32 %v2537_v12, %v4723_v52 }
 0x337   : > { %2789 = vxpose.xlu2.b32.start [1/16] (narrow) %v2685_v27, 32  ;;  %v2687_v32 = vmax.f32 %v2623_v13, 0.0  ;;  %v2688_v41 = vmax.f32 %v2624_v6, 0.0  ;;  %v2626_v18 = vmul.f32 %v2543_v33, %v4718_v7  ;;  %v2508_v6 = vrot.slane %v4434_v58, 5  ;;  %v4724_v51 = vld [vmem:[#allocation45_spill] sm:$0xff] }
 0x338   : > { %v3102_v14 = vmul.f32 -1.442695, %v2415_v0  ;;  %v2599_v27 = vmul.f32 %v2530_v47, %v4716_v4  ;;  %v2689_v37 = vmax.f32 %v2625_v48, 0.0  ;;  %v2600_v17 = vmul.f32 %v2530_v47, %v4719_v22  ;;  %v4726_v47 = vld [vmem:[#allocation31_spill] sm:$0xff]  ;;  %v4730_v22 = vld [vmem:[#allocation53_spill] sm:$0xff] }
 0x339   : > { %2723 = vxpose.xlu0.b32.cont [7/16] (narrow) %v2659_v40, 32  ;;  %v2690_v23 = vmax.f32 %v2626_v18, 0.0  ;;  %v2514_v0 = vrot.slane %v4444_v43, 4  ;;  %v2678_v55 = vmax.f32 %v2614_v26, 0.0  ;;  %v2538_v8 = vperm.slane %v2508_v6, 0  ;;  %v4727_v4 = vld [vmem:[#allocation51_spill] sm:$0xff] }
 0x33a   : > { %3192 = vpow2.f32 %v3102_v14  ;;  %v2663_v40 = vmax.f32 %v2599_v27, 0.0  ;;  %v2664_v15 = vmax.f32 %v2600_v17, 0.0  ;;  %v4729_v18 = vld [vmem:[#allocation34_spill] sm:$0xff] }
 0x33b   : > { %v2545_v35 = vperm.slane %v2514_v0, 0  ;;  %v2615_v20 = vmul.f32 %v2538_v8, %v4726_v47  ;;  %v4734_v26 = vld [vmem:[#allocation38_spill] sm:$0xff]  ;;  %v2510_v0 = vrot.slane %v4434_v58, 7 }
 0x33d   : > { %2752 = vxpose.xlu1.b32.cont [4/16] (narrow) %v2672_v19, 32  ;;  %v2513_v19 = vrot.slane %v4444_v43, 3  ;;  %v2629_v27 = vmul.f32 %v2545_v35, %v4727_v4  ;;  %v2630_v17 = vmul.f32 %v2545_v35, %v4730_v22 }
 0x33f   : > { %2790 = vxpose.xlu2.b32.cont [2/16] (narrow) %v2686_v3, 32  ;;  %v2502_v3 = vrot.slane %v4424_v25, 6  ;;  %v2544_v61 = vperm.slane %v2513_v19, 0  ;;  %v2679_v25 = vmax.f32 %v2615_v20, 0.0  ;;  %v2616_v19 = vmul.f32 %v2538_v8, %v4729_v18  ;;  %v4738_v20 = vld [vmem:[#allocation47_spill] sm:$0xff] }
 0x340   : > { %v3193_v56 = vpop.eup %3192  ;;  %v2516_v8 = vrot.slane %v4444_v43, 6 }
 0x341   : > { %2724 = vxpose.xlu0.b32.cont [8/16] (narrow) %v2660_v9, 32  ;;  %v2432_v45 = vadd.f32 1.0, %v3193_v56  ;;  %v4720_v9 = vld [vmem:[#allocation24_spill] sm:$0xff]  ;;  %v2531_v13 = vperm.slane %v2502_v3, 0  ;;  %v2515_v3 = vrot.slane %v4444_v43, 5 }
 0x342   : > { %v2613_v31 = vmul.f32 %v2537_v12, %v4720_v9  ;;  %v2547_v47 = vperm.slane %v2516_v8, 0 }
 0x343   : > { %3194 = vrcp.f32 %v2432_v45  ;;  %v2489_v50 = vand.u32 2147483648, %v2432_v45  ;;  %vm2483_vm8 = vweird.f32 %v2432_v45  ;;  %v2487_v7 = vand.u32 2147483647, %v2432_v45 }
 0x344   : > { %v2677_v16 = vmax.f32 %v2613_v31, 0.0  ;;  %v4731_v31 = vld [vmem:[#allocation43_spill] sm:$0xff] }
 0x345   : > { %2753 = vxpose.xlu1.b32.cont [5/16] (narrow) %v2673_v42, 32  ;;  %v4721_v42 = vld [vmem:[#allocation44_spill] sm:$0xff]  ;;  %vm2488_vm10 = vcmp.eq.f32.partialorder %v2487_v7, 8.507059e+37  ;;  %v2517_v7 = vrot.slane %v4444_v43, 7  ;;  %v4744_v43 = vld [vmem:[#allocation33_spill] sm:$0xff] }
 0x346   : > { %v2627_v62 = vmul.f32 %v2544_v61, %v4721_v42  ;;  %v2546_v42 = vperm.slane %v2515_v3, 0 }
 0x347   : > { %2791 = vxpose.xlu2.b32.cont [3/16] (narrow) %v2687_v32, 32  ;;  %v4722_v32 = vld [vmem:[#allocation32_spill] sm:$0xff]  ;;  %v2548_v22 = vperm.slane %v2517_v7, 0 }
 0x348   : > { %v2601_v49 = vmul.f32 %v2531_v13, %v4722_v32  ;;  %v2691_v30 = vmax.f32 %v2627_v62, 0.0  ;;  %v4732_v62 = vld [vmem:[#allocation39_spill] sm:$0xff] }
 0x349   : > { %2725 = vxpose.xlu0.b32.cont [9/16] (narrow) %v2661_v24, 32  ;;  %v3195_v24 = vpop.eup %3194 }
 0x34a   : > { %v2665_v11 = vmax.f32 %v2601_v49, 0.0  ;;  %v2479_v36 = vmul.f32 %v3195_v24, %v2432_v45  ;;  %vm2484_vm7 = vweird.f32 %v3195_v24  ;;  %v2694_v45 = vmax.f32 %v2630_v17, 0.0 }
 0x34b   : > { %vm2485_vm9 = vmor %vm2483_vm8, %vm2484_vm7 }
 0x34c   : > { %v2480_v14 = vsub.f32 1.0, %v2479_v36  ;;  %v4735_v36 = vld [vmem:[#allocation42_spill] sm:$0xff] }
 0x34d   : > { %2754 = vxpose.xlu1.b32.cont [6/16] (narrow) %v2674_v53, 32  ;;  %v2628_v53 = vmul.f32 %v2544_v61, %v4724_v51  ;;  %v2680_v61 = vmax.f32 %v2616_v19, 0.0  ;;  %v4741_v19 = vld [vmem:[#allocation48_spill] sm:$0xff] }
 0x34f   : > { %2792 = vxpose.xlu2.b32.cont [4/16] (narrow) %v2688_v41, 32  ;;  %v4725_v41 = vld [vmem:[#allocation36_spill] sm:$0xff]  ;;  %v2692_v54 = vmax.f32 %v2628_v53, 0.0 }
 0x350   : > { %v2602_v33 = vmul.f32 %v2531_v13, %v4725_v41 }
 0x351   : > { %2726 = vxpose.xlu0.b32.cont [10/16] (narrow) %v2662_v28, 32  ;;  %v2532_v28 = vperm.slane %v2503_v59, 0  ;;  %v4736_v59 = vld [vmem:[#allocation57_spill] sm:$0xff] }
 0x352   : > { %v2666_v48 = vmax.f32 %v2602_v33, 0.0  ;;  %v2540_v33 = vperm.slane %v2510_v0, 0 }
 0x355   : > { %2755 = vxpose.xlu1.b32.cont [7/16] (narrow) %v2675_v2, 32  ;;  %v2481_v2 = vmul.f32 %v3195_v24, %v2480_v14  ;;  %v4737_v14 = vld [vmem:[#allocation41_spill] sm:$0xff] }
 0x357   : > { %2793 = vxpose.xlu2.b32.cont [5/16] (narrow) %v2689_v37, 32  ;;  %v4728_v37 = vld [vmem:[#allocation40_spill] sm:$0xff]  ;;  %v2482_v10 = vadd.f32 %v3195_v24, %v2481_v2 }
 0x358   : > { %v2603_v1 = vmul.f32 %v2532_v28, %v4728_v37  ;;  %v4739_v37 = vld [vmem:[#allocation46_spill] sm:$0xff] }
 0x359   : > { %2727 = vxpose.xlu0.b32.cont [11/16] (narrow) %v2663_v40, 32  ;;  %v2693_v40 = vmax.f32 %v2629_v27, 0.0  ;;  %v2486_v12 = vsel %vm2485_vm9, %v3195_v24, %v2482_v10  ;;  %v4740_v10 = vld [vmem:[#allocation49_spill] sm:$0xff] }
 0x35a   : > { %v2667_v56 = vmax.f32 %v2603_v1, 0.0 }
 0x35d   : > { %2756 = vxpose.xlu1.b32.cont [8/16] (narrow) %v2676_v63, 32  ;;  %v2509_v63 = vrot.slane %v4434_v58, 6  ;;  %v2633_v58 = vmul.f32 %v2547_v47, %v4271_v38 }
 0x35f   : > { %2794 = vxpose.xlu2.b32.cont [6/16] (narrow) %v2690_v23, 32  ;;  %v2490_v23 = vor.u32 1.1754944e-38, %v2489_v50  ;;  %v2539_v9 = vperm.slane %v2509_v63, 0 }
 0x361   : > { %2728 = vxpose.xlu0.b32.cont [12/16] (narrow) %v2664_v15, 32  ;;  %v2604_v15 = vmul.f32 %v2532_v28, %v4731_v31  ;;  %v4491_v13 = vsel %vm2488_vm10, %v2490_v23, %v2486_v12  ;;  %v2618_v51 = vmul.f32 %v2539_v9, %v4735_v36  ;;  %v4742_v23 = vld [vmem:[#allocation30_spill] sm:$0xff] }
 0x362   : > { %v2549_v49 = vperm.slane %v4491_v13, 0  ;;  %v2518_v35 = vrot.slane %v4491_v13, 1  ;;  %v2519_v12 = vrot.slane %v4491_v13, 2  ;;  %v2521_v36 = vrot.slane %v4491_v13, 4 }
 0x363   : > { %v2668_v32 = vmax.f32 %v2604_v15, 0.0  ;;  %v2682_v41 = vmax.f32 %v2618_v51, 0.0  ;;  %v2522_v8 = vrot.slane %v4491_v13, 5 }
 0x364   : > { %v2550_v4 = vperm.slane %v2518_v35, 0  ;;  %v2551_v3 = vperm.slane %v2519_v12, 0 }
 0x365   : > { %2757 = vxpose.xlu1.b32.cont [9/16] (narrow) %v2677_v16, 32  ;;  %v2617_v16 = vmul.f32 %v2539_v9, %v4732_v62  ;;  %v4743_v9 = vld [vmem:[#allocation52_spill] sm:$0xff] }
 0x366   : > { %v2639_v1 = vmul.f32 %v2550_v4, %v4739_v37  ;;  %v2640_v63 = vmul.f32 %v2550_v4, %v4741_v19  ;;  %v2641_v31 = vmul.f32 %v2551_v3, %v4743_v9 }
 0x367   : > { %2795 = vxpose.xlu2.b32.cont [7/16] (narrow) %v2691_v30, 32  ;;  %v4733_v30 = vld [vmem:[#allocation55_spill] sm:$0xff]  ;;  %v2681_v52 = vmax.f32 %v2617_v16, 0.0  ;;  %v2520_v16 = vrot.slane %v4491_v13, 3 }
 0x368   : > { %v2631_v24 = vmul.f32 %v2546_v42, %v4733_v30  ;;  %v2703_v50 = vmax.f32 %v2639_v1, 0.0  ;;  %v2704_v17 = vmax.f32 %v2640_v63, 0.0 }
 0x369   : > { %2729 = vxpose.xlu0.b32.cont [13/16] (narrow) %v2665_v11, 32  ;;  %v2637_v11 = vmul.f32 %v2549_v49, %v4734_v26  ;;  %v2552_v30 = vperm.slane %v2520_v16, 0 }
 0x36a   : > { %v2695_v6 = vmax.f32 %v2631_v24, 0.0  ;;  %v4746_v24 = vld [vmem:[#allocation56_spill] sm:$0xff] }
 0x36b   : > { %v2701_v53 = vmax.f32 %v2637_v11, 0.0  ;;  %v4747_v11 = vld [vmem:[#allocation58_spill] sm:$0xff] }
 0x36d   : > { %2758 = vxpose.xlu1.b32.cont [10/16] (narrow) %v2678_v55, 32  ;;  %v2632_v55 = vmul.f32 %v2546_v42, %v4736_v59  ;;  %v4745_v42 = vld [vmem:[#allocation54_spill] sm:$0xff] }
 0x36e   : > { %v2642_v62 = vmul.f32 %v2551_v3, %v4745_v42 }
 0x36f   : > { %2796 = vxpose.xlu2.b32.cont [8/16] (narrow) %v2692_v54, 32  ;;  %v2638_v54 = vmul.f32 %v2549_v49, %v4737_v14  ;;  %v2696_v28 = vmax.f32 %v2632_v55, 0.0 }
 0x370   : > { %v2706_v49 = vmax.f32 %v2642_v62, 0.0 }
 0x371   : > { %2730 = vxpose.xlu0.b32.cont [14/16] (narrow) %v2666_v48, 32  ;;  %v2619_v48 = vmul.f32 %v2540_v33, %v4738_v20  ;;  %v2702_v2 = vmax.f32 %v2638_v54, 0.0 }
 0x373   : > { %v2683_v27 = vmax.f32 %v2619_v48, 0.0 }
 0x375   : > { %2759 = vxpose.xlu1.b32.cont [11/16] (narrow) %v2679_v25, 32  ;;  %v2697_v25 = vmax.f32 %v2633_v58, 0.0  ;;  %v2524_v58 = vrot.slane %v4491_v13, 7 }
 0x377   : > { %2797 = vxpose.xlu2.b32.cont [9/16] (narrow) %v2693_v40, 32  ;;  %v2620_v40 = vmul.f32 %v2540_v33, %v4740_v10  ;;  %v2554_v33 = vperm.slane %v2522_v8, 0  ;;  %v2556_v37 = vperm.slane %v2524_v58, 0 }
 0x379   : > { %2731 = vxpose.xlu0.b32.cont [15/16] (narrow) %v2667_v56, 32  ;;  %v2634_v56 = vmul.f32 %v2547_v47, %v4320_v60  ;;  %v2684_v18 = vmax.f32 %v2620_v40, 0.0  ;;  %v2705_v60 = vmax.f32 %v2641_v31, 0.0  ;;  %v2647_v14 = vmul.f32 %v2554_v33, %v4344_v46 }
 0x37a   : > { %v2648_v35 = vmul.f32 %v2554_v33, %v4351_v57 }
 0x37b   : > { %v2698_v38 = vmax.f32 %v2634_v56, 0.0  ;;  %v2711_v54 = vmax.f32 %v2647_v14, 0.0 }
 0x37c   : > { %v2712_v47 = vmax.f32 %v2648_v35, 0.0 }
 0x37d   : > { %2760 = vxpose.xlu1.b32.cont [12/16] (narrow) %v2680_v61, 32  ;;  %v2635_v61 = vmul.f32 %v2548_v22, %v4742_v23 }
 0x37f   : > { %2798 = vxpose.xlu2.b32.cont [10/16] (narrow) %v2694_v45, 32  ;;  %v2699_v15 = vmax.f32 %v2635_v61, 0.0  ;;  %v2636_v45 = vmul.f32 %v2548_v22, %v4744_v43 }
 0x381   : > { %2732 = vxpose.xlu0.b32.end [16/16] (narrow) %v2668_v32, 32  ;;  %v2700_v32 = vmax.f32 %v2636_v45, 0.0 }
 0x385   : > { %2761 = vxpose.xlu1.b32.cont [13/16] (narrow) %v2681_v52, 32  ;;  %v2643_v52 = vmul.f32 %v2552_v30, %v4746_v24 }
 0x387   : > { %2799 = vxpose.xlu2.b32.cont [11/16] (narrow) %v2695_v6, 32  ;;  %v2707_v26 = vmax.f32 %v2643_v52, 0.0  ;;  %v2644_v6 = vmul.f32 %v2552_v30, %v4747_v11 }
 0x389   : > { %2821 = vxpose.xlu0.b32.start [1/16] (narrow) %v2701_v53, 32  ;;  %v2708_v51 = vmax.f32 %v2644_v6, 0.0  ;;  %v2553_v53 = vperm.slane %v2521_v36, 0 }
 0x38b   : > { %v2645_v0 = vmul.f32 %v2553_v53, %v4318_v21  ;;  %v2646_v55 = vmul.f32 %v2553_v53, %v4324_v29 }
 0x38d   : > { %2762 = vxpose.xlu1.b32.cont [14/16] (narrow) %v2682_v41, 32  ;;  %v2709_v59 = vmax.f32 %v2645_v0, 0.0  ;;  %v2710_v41 = vmax.f32 %v2646_v55, 0.0 }
 0x38f   : > { %2800 = vxpose.xlu2.b32.cont [12/16] (narrow) %v2696_v28, 32  ;;  %v2523_v28 = vrot.slane %v4491_v13, 6 }
 0x391   : > { %2822 = vxpose.xlu0.b32.cont [2/16] (narrow) %v2702_v2, 32  ;;  %v2555_v21 = vperm.slane %v2523_v28, 0 }
 0x393   : > { %v2649_v46 = vmul.f32 %v2555_v21, %v4369_v34  ;;  %v2650_v4 = vmul.f32 %v2555_v21, %v4384_v44  ;;  %v2651_v34 = vmul.f32 %v2556_v37, %v4398_v5  ;;  %v2652_v44 = vmul.f32 %v2556_v37, %v4405_v39 }
 0x395   : > { %2763 = vxpose.xlu1.b32.cont [15/16] (narrow) %v2683_v27, 32  ;;  %v2713_v57 = vmax.f32 %v2649_v46, 0.0  ;;  %v2714_v27 = vmax.f32 %v2650_v4, 0.0  ;;  %v2716_v13 = vmax.f32 %v2652_v44, 0.0 }
 0x397   : > { %2801 = vxpose.xlu2.b32.cont [13/16] (narrow) %v2697_v25, 32  ;;  %v2715_v25 = vmax.f32 %v2651_v34, 0.0 }
 0x399   : > { %2823 = vxpose.xlu0.b32.cont [3/16] (narrow) %v2703_v50, 32 }
 0x39d   : > { %2764 = vxpose.xlu1.b32.end [16/16] (narrow) %v2684_v18, 32 }
 0x39f   : > { %2802 = vxpose.xlu2.b32.cont [14/16] (narrow) %v2698_v38, 32 }
 0x3a1   : > { %2824 = vxpose.xlu0.b32.cont [4/16] (narrow) %v2704_v17, 32 }
 0x3a7   : > { %2803 = vxpose.xlu2.b32.cont [15/16] (narrow) %v2699_v15, 32 }
 0x3a9   : > { %2825 = vxpose.xlu0.b32.cont [5/16] (narrow) %v2705_v60, 32 }
 0x3ad   : > { %v2733_v20 = vpop.trf.xlu0 }
 0x3ae   : > { %2781 = vst [vmem:[%s4526_s20] sm:$0xff] %v2733_v20 }
 0x3af   : > { %2804 = vxpose.xlu2.b32.end [16/16] (narrow) %v2700_v32, 32 }
 0x3b1   : > { %2826 = vxpose.xlu0.b32.cont [6/16] (narrow) %v2706_v49, 32 }
 0x3b5   : > { %v2734_v2 = vpop.trf.xlu0 }
 0x3b6   : > { %2783 = vst [vmem:[%s4526_s20 + $0x10] sm:$0xff] %v2734_v2 }
 0x3b9   : > { %2827 = vxpose.xlu0.b32.cont [7/16] (narrow) %v2707_v26, 32 }
 0x3bd   : > { %v2735_v1 = vpop.trf.xlu0 }
 0x3be   : > { %2785 = vst [vmem:[%s4526_s20 + $0x20] sm:$0xff] %v2735_v1 }
 0x3c1   : > { %2828 = vxpose.xlu0.b32.cont [8/16] (narrow) %v2708_v51, 32 }
 0x3c5   : > { %v2736_v10 = vpop.trf.xlu0 }
 0x3c6   : > { %2787 = vst [vmem:[%s4526_s20 + $0x30] sm:$0xff] %v2736_v10 }
 0x3c9   : > { %2829 = vxpose.xlu0.b32.cont [9/16] (narrow) %v2709_v59, 32  ;;  %v2765_v29 = vpop.trf.xlu1 }
 0x3ca   : > { %2782 = vst [vmem:[%s4526_s20 + $0x8] sm:$0xff] %v2765_v29 }
 0x3d0   : > { %v2805_v48 = vpop.trf.xlu2 }
 0x3d1   : > { %2830 = vxpose.xlu0.b32.cont [10/16] (narrow) %v2710_v41, 32  ;;  %3103 = vst [vmem:[%s4526_s20 + $0x40] sm:$0xff] %v2805_v48  ;;  %v2766_v50 = vpop.trf.xlu1 }
 0x3d2   : > { %2784 = vst [vmem:[%s4526_s20 + $0x18] sm:$0xff] %v2766_v50 }
 0x3d8   : > { %v2806_v40 = vpop.trf.xlu2 }
 0x3d9   : > { %2831 = vxpose.xlu0.b32.cont [11/16] (narrow) %v2711_v54, 32  ;;  %3105 = vst [vmem:[%s4526_s20 + $0x50] sm:$0xff] %v2806_v40  ;;  %v2767_v5 = vpop.trf.xlu1 }
 0x3da   : > { %2786 = vst [vmem:[%s4526_s20 + $0x28] sm:$0xff] %v2767_v5 }
 0x3e0   : > { %v2807_v56 = vpop.trf.xlu2 }
 0x3e1   : > { %2832 = vxpose.xlu0.b32.cont [12/16] (narrow) %v2712_v47, 32  ;;  %3107 = vst [vmem:[%s4526_s20 + $0x60] sm:$0xff] %v2807_v56  ;;  %v2768_v18 = vpop.trf.xlu1 }
 0x3e2   : > { %2788 = vst [vmem:[%s4526_s20 + $0x38] sm:$0xff] %v2768_v18 }
 0x3e8   : > { %v2808_v7 = vpop.trf.xlu2 }
 0x3e9   : > { %2833 = vxpose.xlu0.b32.cont [13/16] (narrow) %v2713_v57, 32  ;;  %3109 = vst [vmem:[%s4526_s20 + $0x70] sm:$0xff] %v2808_v7 }
 0x3f1   : > { %2834 = vxpose.xlu0.b32.cont [14/16] (narrow) %v2714_v27, 32 }
 0x3f9   : > { %2835 = vxpose.xlu0.b32.cont [15/16] (narrow) %v2715_v25, 32 }
 0x401   : > { %2836 = vxpose.xlu0.b32.end [16/16] (narrow) %v2716_v13, 32 }
 0x42d   : > { %v2837_v39 = vpop.trf.xlu0 }
 0x42e   : > { %3104 = vst [vmem:[%s4526_s20 + $0x48] sm:$0xff] %v2837_v39 }
 0x435   : > { %v2838_v19 = vpop.trf.xlu0 }
 0x436   : > { %3106 = vst [vmem:[%s4526_s20 + $0x58] sm:$0xff] %v2838_v19 }
 0x43d   : > { %v2839_v63 = vpop.trf.xlu0 }
 0x43e   : > { %3108 = vst [vmem:[%s4526_s20 + $0x68] sm:$0xff] %v2839_v63 }
 0x445   : > { %v2840_v12 = vpop.trf.xlu0 }
 0x446   : > { %3110 = vst [vmem:[%s4526_s20 + $0x78] sm:$0xff] %v2840_v12 }
 0x447   : > { %3254 = shalt.err (!%p3251_p4)
}
 0x448   : > { %s3297_s26 = smov 256   ;;  %s3298_s20 = smov 16  }
 0x449   : > { %3129 = dma.vmem_to_hbm [thread:$0]  (%p3394_p11), %s2877_s13, 2048, %s2879_s21, %s2863_s15, %s3297_s26, %s3297_s26, %s3298_s20  }
 0x44a PF: > { %s2893_s16 = sand.u32 1, %s3281_s27   ;;  %p4748_p7 = scmp.ge.s32.totalorder %s3293_s30, 2 }
 0x44b   : > { %s2894_s25 = scalar_lea.sflag [#allocation4], %s2893_s16 }
 0x44c   : > { %p3136_p5 = pnand %p4748_p7, %p3398_p12 }
 0x44e   : > { %p3137_p8 = pneg %p3136_p5 }
 0x450   : > { %3276 = dma.done.wait (%p3137_p8), %s2894_s25, 2048  }
 0x451   : > { %3278 = vsyncadd (%p3137_p8), %s2894_s25, 4294965248  ;;  %s4749_s10 = sld [smem:[#allocation8_spill]]  ;;  %p21_p10 = scmp.ge.s32.totalorder %s3369_s11, 4  }
 0x452   : > { %s4750_s29 = sld [smem:[#allocation9_spill]]  ;;  %s4751_s27 = smov %s3285_s28 }
 0x453   : > { %s4753_s30 = smov %s3369_s11  ;;  %23 = sbr.rel (!%p21_p10) target bundleno = 5 (0x5), region = 98 }
 0x457   : > { %s4752_s28 = smov %s4749_s10 }
 0x458   :  { %2900 = vsyncpa [#allocation3], 1 }
 0x459   :  { %2902 = vsyncpa [#allocation3 + $0x1], 1 }
 0x45a   :  { %2903 = vsyncpa [#allocation4], 1 }
 0x45b   :  { %2905 = vsyncpa [#allocation4 + $0x1], 1 }

</bundles_post_ra>
